<compile_context>
chip_gen: v5e
topology: v5e:2x2
jax: 0.10.0
libtpu: 0.0.40
codegen_flags: <defaults>
</compile_context>

<pallas_src>
import jax
import jax.numpy as jnp
from jax import lax
from jax.experimental import pallas as pl
from jax.experimental.pallas import tpu as pltpu

WIN_SIZES = (1, 3, 5)
MAX_PAD = max(WIN_SIZES) // 2          # = 2
NUM_TAPS = 2 * MAX_PAD + 1             # = 5


def _round_up(x, m):
    return (x + m - 1) // m * m


def _char_encoder_kernel(ids_ref, emb_ref, rhs_ref, cb_ref, lw_ref, lb_ref, out_ref):
    """ids_ref: (TN, Wp) int32 padded char ids (pad sentinel = -1).
    emb_ref:   (V, E)       embedding table (f32 or bf16).
    rhs_ref:   (5, E, 3H)   packed conv taps for win sizes 1/3/5.
    cb_ref:    (1, 3H)      packed conv biases.
    lw_ref:    (3H, H)      final linear weight.
    lb_ref:    (1, H)       final linear bias.
    out_ref:   (TN, H)."""
    tn, wp = ids_ref.shape
    v, _ = emb_ref.shape
    w = wp - 2 * MAX_PAD
    three_h = rhs_ref.shape[2]
    cdtype = emb_ref.dtype

    # --- fused embedding gather (+ implicit zero padding) via one-hot matmul ---
    ids = ids_ref[...]                                               # (TN, Wp) int32
    ids_b = lax.broadcast_in_dim(ids, (tn, wp, v), (0, 1))           # lane broadcast
    iota_v = lax.broadcasted_iota(jnp.int32, (tn, wp, v), 2)
    onehot = (ids_b == iota_v).astype(cdtype)                        # (TN, Wp, V)
    x_pad = lax.dot_general(
        onehot, emb_ref[...],
        dimension_numbers=(((2,), (0,)), ((), ())),
        preferred_element_type=cdtype)                               # (TN, Wp, E)

    # --- fused conv1/conv3/conv5: 5 taps, each one matmul producing (TN, W, 3H) ---
    acc = jnp.zeros((tn, w, three_h), jnp.float32)
    for t in range(NUM_TAPS):                                        # static unroll
        xs = x_pad[:, t:t + w, :]                                    # (TN, W, E)
        acc = acc + lax.dot_general(
            xs, rhs_ref[t],                                          # (E, 3H)
            dimension_numbers=(((2,), (0,)), ((), ())),
            preferred_element_type=jnp.float32)                      # (TN, W, 3H)
    acc = acc + cb_ref[...].astype(jnp.float32)[:, None, :]          # + (1,1,3H)
    acc = jnp.maximum(acc, 0.0)                                      # ReLU
    feat = jnp.max(acc, axis=1)                                      # max_pool1d -> (TN, 3H)

    # --- final linear (tiny; done in f32 regardless of param dtype) ---
    out = jnp.dot(feat, lw_ref[...].astype(jnp.float32),
                  preferred_element_type=jnp.float32)
    out = out + lb_ref[...].astype(jnp.float32)
    out_ref[...] = out.astype(out_ref.dtype)


def pack_params(params, char_hidden_size, dtype=jnp.float32):
    """Repack PyTorch-layout parameters for the kernel."""
    H = char_hidden_size
    emb = params["embedding"].astype(dtype)                          # (V, E)
    E = emb.shape[1]

    rhs = jnp.zeros((NUM_TAPS, E, 3 * H), dtype)
    biases = []
    for ci, w in enumerate(WIN_SIZES):
        wt = jnp.transpose(params[f"conv{w}_w"].astype(dtype), (2, 1, 0))  # (w, E, H)
        start = MAX_PAD - w // 2
        rhs = rhs.at[start:start + w, :, ci * H:(ci + 1) * H].set(wt)
        biases.append(params[f"conv{w}_b"].astype(dtype).reshape(1, H))
    cb = jnp.concatenate(biases, axis=-1)                            # (1, 3H)

    lw = jnp.transpose(params["lin_w"].astype(dtype), (1, 0))        # (3H, H)
    lb = params["lin_b"].astype(dtype).reshape(1, H)                 # (1, H)
    return dict(embedding=emb, conv_rhs=rhs, conv_b=cb, lin_w=lw, lin_b=lb)


def char_encoder_forward(chars, params, *, char_hidden_size,
                         param_dtype=jnp.float32, tile_n=1024):
    """chars: int32 (batch, max_seq_len, max_wd_len) -> f32 (batch, max_seq_len, H)."""
    packed = pack_params(params, char_hidden_size, dtype=param_dtype)
    batch, seq, wlen = chars.shape
    N = batch * seq
    H = char_hidden_size
    Wp = wlen + 2 * MAX_PAD

    # Big tiles, padded grid (pad rows produce garbage that is sliced away).
    tile = min(tile_n, _round_up(N, 8))
    n_pad = _round_up(N, tile)
    grid = (n_pad // tile,)

    # Only tiny int32 ids cross HBM for the activations; -1 sentinels give exact
    # zero embedding rows, which implements both the conv padding and the row pad.
    ids = chars.reshape(N, wlen).astype(jnp.int32)
    ids = jnp.pad(ids, ((0, n_pad - N), (MAX_PAD, MAX_PAD)), constant_values=-1)

    full = lambda shape: pl.BlockSpec(shape, lambda i: (0,) * len(shape))

    out = pl.pallas_call(
        _char_encoder_kernel,
        out_shape=jax.ShapeDtypeStruct((n_pad, H), jnp.float32),
        grid_spec=pltpu.PrefetchScalarGridSpec(
            num_scalar_prefetch=0,
            grid=grid,
            in_specs=[
                pl.BlockSpec((tile, Wp), lambda i: (i, 0)),
                full(packed["embedding"].shape),
                full(packed["conv_rhs"].shape),
                full(packed["conv_b"].shape),
                full(packed["lin_w"].shape),
                full(packed["lin_b"].shape),
            ],
            out_specs=pl.BlockSpec((tile, H), lambda i: (i, 0)),
        ),
        compiler_params=pltpu.CompilerParams(
            dimension_semantics=("parallel",)),
    )(ids, packed["embedding"], packed["conv_rhs"], packed["conv_b"],
      packed["lin_w"], packed["lin_b"])

    return out[:N].reshape(batch, seq, H)


def init_params(key, vocab_size, char_embedding_size, char_hidden_size):
    """Deterministic synthetic parameters in the PyTorch module's native layouts."""
    E, H = char_embedding_size, char_hidden_size
    ks = jax.random.split(key, 9)
    params = {
        # nn.Embedding weight, init uniform(-0.32, 0.32)
        "embedding": jax.random.uniform(ks[0], (vocab_size, E), jnp.float32,
                                        -0.32, 0.32),
    }
    for i, w in enumerate(WIN_SIZES):
        params[f"conv{w}_w"] = jax.random.normal(ks[1 + i], (H, E, w), jnp.float32) * 0.1
        params[f"conv{w}_b"] = jax.random.normal(ks[4 + i], (H,), jnp.float32) * 0.1
    params["lin_w"] = jax.random.normal(ks[7], (H, 3 * H), jnp.float32) * 0.1
    params["lin_b"] = jax.random.normal(ks[8], (H,), jnp.float32) * 0.1
    return params


def _reference_forward(chars, params, *, char_hidden_size):
    """Pure-JAX reference mirroring the PyTorch forward (inference mode)."""
    emb = params["embedding"].astype(jnp.float32)
    batch, seq, wlen = chars.shape
    N = batch * seq
    H = char_hidden_size
    x = jnp.take(emb, chars.reshape(N, wlen), axis=0)                # (N, W, E)
    x_ncw = jnp.transpose(x, (0, 2, 1))                              # (N, E, W)
    pooled = []
    for w in WIN_SIZES:
        rhs = params[f"conv{w}_w"].astype(jnp.float32)               # (H, E, w)
        conv = lax.conv_general_dilated(
            x_ncw, rhs, window_strides=(1,), padding=[(w // 2, w // 2)],
            dimension_numbers=("NCH", "OIH", "NCH"))
        conv = conv + params[f"conv{w}_b"].astype(jnp.float32)[None, :, None]
        conv = jnp.maximum(conv, 0.0)
        pooled.append(jnp.max(conv, axis=2))                         # (N, H)
    feat = jnp.concatenate(pooled, axis=1)                           # (N, 3H)
    out = feat @ params["lin_w"].astype(jnp.float32).T \
        + params["lin_b"].astype(jnp.float32)
    return out.reshape(batch, seq, H)


if __name__ == "__main__":
    # Small shapes consistent with the module's forward.
    batch, max_seq_len, max_wd_len = 2, 8, 6
    vocab_size, char_embedding_size, char_hidden_size = 40, 16, 32

    key = jax.random.PRNGKey(0)
    k_params, k_chars = jax.random.split(key)
    params = init_params(k_params, vocab_size, char_embedding_size, char_hidden_size)
    chars = jax.random.randint(
        k_chars, (batch, max_seq_len, max_wd_len), 0, vocab_size, dtype=jnp.int32)

    # f32 parameter path (tight check against an independent JAX reference).
    out = char_encoder_forward(chars, params, char_hidden_size=char_hidden_size)
    out = jax.block_until_ready(out)
    assert out.shape == (batch, max_seq_len, char_hidden_size)
    ref = jax.block_until_ready(
        _reference_forward(chars, params, char_hidden_size=char_hidden_size))
    assert jnp.allclose(out, ref, rtol=1e-4, atol=1e-4), "f32 mismatch vs reference"

    # bf16 parameter-storage path (compare against reference on bf16-rounded params).
    params_bf16 = jax.tree_util.tree_map(
        lambda a: a.astype(jnp.bfloat16).astype(jnp.float32), params)
    out_bf16 = jax.block_until_ready(
        char_encoder_forward(chars, params, char_hidden_size=char_hidden_size,
                             param_dtype=jnp.bfloat16))
    ref_bf16 = jax.block_until_ready(
        _reference_forward(chars, params_bf16, char_hidden_size=char_hidden_size))
    assert jnp.allclose(out_bf16, ref_bf16, rtol=2e-3, atol=2e-3), \
        "bf16 mismatch vs reference"

    print("KERNEL_OK")
</pallas_src>

<mosaic_0001>
module attributes {stable_mosaic.version = 11 : i64} {
  func.func @_char_encoder_kernel(%arg0: i32, %arg1: memref<16x10xi32, #tpu.memory_space<vmem>>, %arg2: memref<40x16xf32, #tpu.memory_space<vmem>>, %arg3: memref<5x16x96xf32, #tpu.memory_space<vmem>>, %arg4: memref<1x96xf32, #tpu.memory_space<vmem>>, %arg5: memref<96x32xf32, #tpu.memory_space<vmem>>, %arg6: memref<1x32xf32, #tpu.memory_space<vmem>>, %arg7: memref<16x32xf32, #tpu.memory_space<vmem>>) attributes {dimension_semantics = [#tpu.dimension_semantics<parallel>], iteration_bounds = array<i64: 1>, scalar_prefetch = 0 : i64, scratch_operands = 0 : i64, tpu.core_type = #tpu.core_type<tc>, window_params = [{transform_indices = @transform_0, window_bounds = array<i64: 16, 10>}, {pipeline_mode = #tpu.pipeline_mode<synchronous>, transform_indices = @transform_1, window_bounds = array<i64: 40, 16>}, {pipeline_mode = #tpu.pipeline_mode<synchronous>, transform_indices = @transform_2, window_bounds = array<i64: 5, 16, 96>}, {pipeline_mode = #tpu.pipeline_mode<synchronous>, transform_indices = @transform_3, window_bounds = array<i64: 1, 96>}, {pipeline_mode = #tpu.pipeline_mode<synchronous>, transform_indices = @transform_4, window_bounds = array<i64: 96, 32>}, {pipeline_mode = #tpu.pipeline_mode<synchronous>, transform_indices = @transform_5, window_bounds = array<i64: 1, 32>}, {transform_indices = @transform_6, window_bounds = array<i64: 16, 32>}]} {
    %c0 = arith.constant 0 : index
    %c0_0 = arith.constant 0 : index
    %0 = vector.load %arg1[%c0, %c0_0] : memref<16x10xi32, #tpu.memory_space<vmem>>, vector<16x10xi32>
    %1 = vector.shape_cast %0 : vector<16x10xi32> to vector<16x10x1xi32>
    %2 = vector.broadcast %1 : vector<16x10x1xi32> to vector<16x10x40xi32>
    %3 = tpu.iota {dimensions = array<i32: 2>} : vector<16x10x40xi32>
    %4 = arith.cmpi eq, %2, %3 : vector<16x10x40xi32>
    %5 = arith.extui %4 : vector<16x10x40xi1> to vector<16x10x40xi32>
    %6 = arith.sitofp %5 : vector<16x10x40xi32> to vector<16x10x40xf32>
    %c0_1 = arith.constant 0 : index
    %c0_2 = arith.constant 0 : index
    %7 = vector.load %arg2[%c0_1, %c0_2] : memref<40x16xf32, #tpu.memory_space<vmem>>, vector<40x16xf32>
    %cst = arith.constant dense<0.000000e+00> : vector<16x10x16xf32>
    %8 = tpu.matmul %6, %7, %cst {dimension_numbers = #tpu.dot_dimension_numbers<[2], [0], [0, 1], [1], [0, 0, 0, 1, 1, 1], [], []>} : vector<16x10x40xf32>, vector<40x16xf32>, vector<16x10x16xf32> -> vector<16x10x16xf32>
    %cst_3 = arith.constant 0.000000e+00 : f32
    %9 = vector.broadcast %cst_3 : f32 to vector<16x6x96xf32>
    %10 = vector.extract_strided_slice %8 {offsets = [0, 0, 0], sizes = [16, 6, 16], strides = [1, 1, 1]} : vector<16x10x16xf32> to vector<16x6x16xf32>
    %c0_4 = arith.constant 0 : index
    %c0_5 = arith.constant 0 : index
    %c0_6 = arith.constant 0 : index
    %11 = vector.load %arg3[%c0_4, %c0_5, %c0_6] : memref<5x16x96xf32, #tpu.memory_space<vmem>>, vector<1x16x96xf32>
    %12 = vector.shape_cast %11 : vector<1x16x96xf32> to vector<16x96xf32>
    %cst_7 = arith.constant dense<0.000000e+00> : vector<16x6x96xf32>
    %13 = tpu.matmul %10, %12, %cst_7 {dimension_numbers = #tpu.dot_dimension_numbers<[2], [0], [0, 1], [1], [0, 0, 0, 1, 1, 1], [], []>} : vector<16x6x16xf32>, vector<16x96xf32>, vector<16x6x96xf32> -> vector<16x6x96xf32>
    %14 = arith.addf %9, %13 : vector<16x6x96xf32>
    %15 = vector.extract_strided_slice %8 {offsets = [0, 1, 0], sizes = [16, 6, 16], strides = [1, 1, 1]} : vector<16x10x16xf32> to vector<16x6x16xf32>
    %c1 = arith.constant 1 : index
    %c0_8 = arith.constant 0 : index
    %c0_9 = arith.constant 0 : index
    %16 = vector.load %arg3[%c1, %c0_8, %c0_9] : memref<5x16x96xf32, #tpu.memory_space<vmem>>, vector<1x16x96xf32>
    %17 = vector.shape_cast %16 : vector<1x16x96xf32> to vector<16x96xf32>
    %cst_10 = arith.constant dense<0.000000e+00> : vector<16x6x96xf32>
    %18 = tpu.matmul %15, %17, %cst_10 {dimension_numbers = #tpu.dot_dimension_numbers<[2], [0], [0, 1], [1], [0, 0, 0, 1, 1, 1], [], []>} : vector<16x6x16xf32>, vector<16x96xf32>, vector<16x6x96xf32> -> vector<16x6x96xf32>
    %19 = arith.addf %14, %18 : vector<16x6x96xf32>
    %20 = vector.extract_strided_slice %8 {offsets = [0, 2, 0], sizes = [16, 6, 16], strides = [1, 1, 1]} : vector<16x10x16xf32> to vector<16x6x16xf32>
    %c2 = arith.constant 2 : index
    %c0_11 = arith.constant 0 : index
    %c0_12 = arith.constant 0 : index
    %21 = vector.load %arg3[%c2, %c0_11, %c0_12] : memref<5x16x96xf32, #tpu.memory_space<vmem>>, vector<1x16x96xf32>
    %22 = vector.shape_cast %21 : vector<1x16x96xf32> to vector<16x96xf32>
    %cst_13 = arith.constant dense<0.000000e+00> : vector<16x6x96xf32>
    %23 = tpu.matmul %20, %22, %cst_13 {dimension_numbers = #tpu.dot_dimension_numbers<[2], [0], [0, 1], [1], [0, 0, 0, 1, 1, 1], [], []>} : vector<16x6x16xf32>, vector<16x96xf32>, vector<16x6x96xf32> -> vector<16x6x96xf32>
    %24 = arith.addf %19, %23 : vector<16x6x96xf32>
    %25 = vector.extract_strided_slice %8 {offsets = [0, 3, 0], sizes = [16, 6, 16], strides = [1, 1, 1]} : vector<16x10x16xf32> to vector<16x6x16xf32>
    %c3 = arith.constant 3 : index
    %c0_14 = arith.constant 0 : index
    %c0_15 = arith.constant 0 : index
    %26 = vector.load %arg3[%c3, %c0_14, %c0_15] : memref<5x16x96xf32, #tpu.memory_space<vmem>>, vector<1x16x96xf32>
    %27 = vector.shape_cast %26 : vector<1x16x96xf32> to vector<16x96xf32>
    %cst_16 = arith.constant dense<0.000000e+00> : vector<16x6x96xf32>
    %28 = tpu.matmul %25, %27, %cst_16 {dimension_numbers = #tpu.dot_dimension_numbers<[2], [0], [0, 1], [1], [0, 0, 0, 1, 1, 1], [], []>} : vector<16x6x16xf32>, vector<16x96xf32>, vector<16x6x96xf32> -> vector<16x6x96xf32>
    %29 = arith.addf %24, %28 : vector<16x6x96xf32>
    %30 = vector.extract_strided_slice %8 {offsets = [0, 4, 0], sizes = [16, 6, 16], strides = [1, 1, 1]} : vector<16x10x16xf32> to vector<16x6x16xf32>
    %c4 = arith.constant 4 : index
    %c0_17 = arith.constant 0 : index
    %c0_18 = arith.constant 0 : index
    %31 = vector.load %arg3[%c4, %c0_17, %c0_18] : memref<5x16x96xf32, #tpu.memory_space<vmem>>, vector<1x16x96xf32>
    %32 = vector.shape_cast %31 : vector<1x16x96xf32> to vector<16x96xf32>
    %cst_19 = arith.constant dense<0.000000e+00> : vector<16x6x96xf32>
    %33 = tpu.matmul %30, %32, %cst_19 {dimension_numbers = #tpu.dot_dimension_numbers<[2], [0], [0, 1], [1], [0, 0, 0, 1, 1, 1], [], []>} : vector<16x6x16xf32>, vector<16x96xf32>, vector<16x6x96xf32> -> vector<16x6x96xf32>
    %34 = arith.addf %29, %33 : vector<16x6x96xf32>
    %c0_20 = arith.constant 0 : index
    %c0_21 = arith.constant 0 : index
    %35 = vector.load %arg4[%c0_20, %c0_21] : memref<1x96xf32, #tpu.memory_space<vmem>>, vector<1x96xf32>
    %36 = vector.shape_cast %35 : vector<1x96xf32> to vector<1x1x96xf32>
    %37 = vector.broadcast %36 : vector<1x1x96xf32> to vector<16x6x96xf32>
    %38 = arith.addf %34, %37 : vector<16x6x96xf32>
    %cst_22 = arith.constant 0.000000e+00 : f32
    %39 = vector.broadcast %cst_22 : f32 to vector<16x6x96xf32>
    %40 = arith.maximumf %38, %39 : vector<16x6x96xf32>
    %cst_23 = arith.constant dense<0xFF800000> : vector<16x96xf32>
    %41 = vector.multi_reduction <maximumf>, %40, %cst_23 [1] : vector<16x6x96xf32> to vector<16x96xf32>
    %c0_24 = arith.constant 0 : index
    %c0_25 = arith.constant 0 : index
    %42 = vector.load %arg5[%c0_24, %c0_25] : memref<96x32xf32, #tpu.memory_space<vmem>>, vector<96x32xf32>
    %cst_26 = arith.constant dense<0.000000e+00> : vector<16x32xf32>
    %43 = tpu.matmul %41, %42, %cst_26 {dimension_numbers = #tpu.dot_dimension_numbers<[1], [0], [0], [1], [0, 0, 1, 1], [], []>} : vector<16x96xf32>, vector<96x32xf32>, vector<16x32xf32> -> vector<16x32xf32>
    %c0_27 = arith.constant 0 : index
    %c0_28 = arith.constant 0 : index
    %44 = vector.load %arg6[%c0_27, %c0_28] : memref<1x32xf32, #tpu.memory_space<vmem>>, vector<1x32xf32>
    %45 = vector.broadcast %44 : vector<1x32xf32> to vector<16x32xf32>
    %46 = arith.addf %43, %45 : vector<16x32xf32>
    %c0_29 = arith.constant 0 : index
    %c0_30 = arith.constant 0 : index
    %47 = vector.load %arg7[%c0_29, %c0_30] : memref<16x32xf32, #tpu.memory_space<vmem>>, vector<16x32xf32>
    tpu.vector_store %arg7[%c0_29, %c0_30], %46 {strides = array<i32>} : memref<16x32xf32, #tpu.memory_space<vmem>>, vector<16x32xf32>,
    return
  }
  func.func @transform_0(%arg0: i32) -> (i32, i32) {
    %c0_i32 = arith.constant 0 : i32
    %c0_i32_0 = arith.constant 0 : i32
    return %arg0, %c0_i32 : i32, i32
  }
  func.func @transform_1(%arg0: i32) -> (i32, i32) {
    %c0_i32 = arith.constant 0 : i32
    %c0_i32_0 = arith.constant 0 : i32
    %c0_i32_1 = arith.constant 0 : i32
    return %c0_i32, %c0_i32_0 : i32, i32
  }
  func.func @transform_2(%arg0: i32) -> (i32, i32, i32) {
    %c0_i32 = arith.constant 0 : i32
    %c0_i32_0 = arith.constant 0 : i32
    %c0_i32_1 = arith.constant 0 : i32
    %c0_i32_2 = arith.constant 0 : i32
    return %c0_i32, %c0_i32_0, %c0_i32_1 : i32, i32, i32
  }
  func.func @transform_3(%arg0: i32) -> (i32, i32) {
    %c0_i32 = arith.constant 0 : i32
    %c0_i32_0 = arith.constant 0 : i32
    %c0_i32_1 = arith.constant 0 : i32
    return %c0_i32, %c0_i32_0 : i32, i32
  }
  func.func @transform_4(%arg0: i32) -> (i32, i32) {
    %c0_i32 = arith.constant 0 : i32
    %c0_i32_0 = arith.constant 0 : i32
    %c0_i32_1 = arith.constant 0 : i32
    return %c0_i32, %c0_i32_0 : i32, i32
  }
  func.func @transform_5(%arg0: i32) -> (i32, i32) {
    %c0_i32 = arith.constant 0 : i32
    %c0_i32_0 = arith.constant 0 : i32
    %c0_i32_1 = arith.constant 0 : i32
    return %c0_i32, %c0_i32_0 : i32, i32
  }
  func.func @transform_6(%arg0: i32) -> (i32, i32) {
    %c0_i32 = arith.constant 0 : i32
    %c0_i32_0 = arith.constant 0 : i32
    return %arg0, %c0_i32 : i32, i32
  }
}

</mosaic_0001>

<bundles_post_ra>
// kernel: tpu_custom_call.1
= control target key start
LH: loop header
LB: loop body
LE: loop exit
PB: predicated region body
PF: predicated region fallthrough
CT: control target
= control target key end

     0   :  { %v27_v0 = vlaneseq  ;;  %s4410_s0 = inlined_call_operand.vmem [shape: s32[16,10], index: 0, kind: input, shape index: {}]   ;;  %s4411_s1 = inlined_call_operand.vmem [shape: f32[40,16], index: 1, kind: input, shape index: {}]   ;;  %s4412_s2 = inlined_call_operand.vmem [shape: f32[5,16,96], index: 2, kind: input, shape index: {}]   ;;  %s4413_s3 = inlined_call_operand.vmem [shape: f32[1,96], index: 3, kind: input, shape index: {}]   ;;  %s4414_s4 = inlined_call_operand.vmem [shape: f32[96,32], index: 4, kind: input, shape index: {}]   ;;  %s4415_s5 = inlined_call_operand.vmem [shape: f32[1,32], index: 5, kind: input, shape index: {}]   ;;  %s4416_s6 = inlined_call_operand.hbm [shape: f32[16,32], index: 6, kind: output, shape index: {}]  }
   0x1   :  { %11 = vsyncpa [#allocation3], 0  ;;  %v24_v3 = vld [vmem:[%s4410_s0] sm:$0xff]  ;;  %v25_v12 = vld [vmem:[%s4410_s0 + $0x8] sm:$0xff]  ;;  %v2787_v28 = vmov 0.0   ;;  %vm524_vm4 = vcmask 326656  }
   0x2   :  { %v28_v1 = vshrl.u32 %v27_v0, 7  ;;  %v26_v4 = vperm.slane %v24_v3, 0  ;;  %v39_v5 = vperm.slane %v24_v3, 1  ;;  %v52_v6 = vperm.slane %v24_v3, 2  ;;  %v336_v19 = vld [vmem:[%s4411_s1 + $0x20] sm:$0xff]  ;;  %v335_v20 = vld [vmem:[%s4411_s1 + $0x18] sm:$0xff] }
   0x3   :  { %v65_v7 = vperm.slane %v24_v3, 3  ;;  %v91_v8 = vperm.slane %v24_v3, 5  ;;  %v78_v9 = vperm.slane %v24_v3, 4  ;;  %v104_v10 = vperm.slane %v24_v3, 6  ;;  %576 = vmatpush.msra.mxu0 %v336_v19  ;;  %v334_v21 = vld [vmem:[%s4411_s1 + $0x10] sm:$0xff]  ;;  %v333_v23 = vld [vmem:[%s4411_s1 + $0x8] sm:$0xff] }
   0x4   :  { %2747 = vset.pattern.permute.xlu0 %v28_v1  ;;  %v35_v2 = vadd.s32 8, %v28_v1  ;;  %v117_v11 = vperm.slane %v24_v3, 7  ;;  %v130_v13 = vperm.slane %v25_v12, 0  ;;  %v143_v14 = vperm.slane %v25_v12, 1  ;;  %v332_v24 = vld [vmem:[%s4411_s1] sm:$0xff]  ;;  %s2788_s28 = smov [#allocation2]  }
   0x5   :  { %v156_v15 = vperm.slane %v25_v12, 2  ;;  %v169_v16 = vperm.slane %v25_v12, 3  ;;  %v195_v17 = vperm.slane %v25_v12, 5  ;;  %v182_v18 = vperm.slane %v25_v12, 4  ;;  %577 = vmatpush.msra.mxu0 %v335_v20  ;;  %s2587_s29 = sshll.u32 %s2788_s28, 4  ;;  %s2589_s8 = sshll.u32 %s4416_s6, 4  ;;  %s2588_s29 = int_to_ptr.vmem [resolvable:$true] %s2587_s29  ;;  %s2590_s8 = int_to_ptr.hbm [resolvable:$true] %s2589_s8 }
   0x6   :  { %2748 = vset.pattern.permute.xlu1 %v35_v2  ;;  %2750 = vset.pattern.permute.xlu2 %v35_v2  ;;  %v208_v22 = vperm.slane %v25_v12, 6  ;;  %v221_v25 = vperm.slane %v25_v12, 7  ;;  %v2849_v26 = vand.u32 127, %v27_v0  ;;  %s2789_s9 = smov 128   ;;  %s2790_s1 = smov 8  }
   0x7   :  { %578 = vmatpush.msra.mxu0 %v334_v21 }
   0x9   :  { %579 = vmatpush.msra.mxu0 %v333_v23 }
   0xb   :  { %580 = vmatpush.msra.mxu0 %v332_v24 }
   0xc   :  { %31 = vperm.xlu0 %2747, %v26_v4  }
   0xe   :  { %37 = vperm.xlu1 %2748, %v26_v4   ;;  %50 = vperm.xlu2 %2750, %v39_v5  }
  0x14   :  { %44 = vperm.xlu0 %2747, %v39_v5  }
  0x16   :  { %2749 = vset.pattern.permute.xlu1 %v28_v1  ;;  %63 = vperm.xlu2 %2750, %v52_v6  }
  0x1c   :  { %70 = vperm.xlu0 %2747, %v65_v7  }
  0x1e   :  { %57 = vperm.xlu1 %2749, %v52_v6   ;;  %2752 = vset.pattern.permute.xlu2 %v28_v1 }
  0x24   :  { %96 = vperm.xlu0 %2747, %v91_v8  }
  0x26   :  { %2751 = vset.pattern.permute.xlu1 %v35_v2  ;;  %83 = vperm.xlu2 %2752, %v78_v9  }
  0x2c   :  { %2753 = vset.pattern.permute.xlu0 %v35_v2 }
  0x2e   :  { %76 = vperm.xlu1 %2751, %v65_v7   ;;  %109 = vperm.xlu2 %2752, %v104_v10  }
  0x34   :  { %102 = vperm.xlu0 %2753, %v91_v8  }
  0x36   :  { %89 = vperm.xlu1 %2751, %v78_v9   ;;  %122 = vperm.xlu2 %2752, %v117_v11  }
  0x3c   :  { %2754 = vset.pattern.permute.xlu0 %v28_v1 }
  0x3e   :  { %115 = vperm.xlu1 %2751, %v104_v10   ;;  %135 = vperm.xlu2 %2752, %v130_v13  }
  0x44   :  { %148 = vperm.xlu0 %2754, %v143_v14  }
  0x46   :  { %128 = vperm.xlu1 %2751, %v117_v11   ;;  %161 = vperm.xlu2 %2752, %v156_v15  }
  0x4c   :  { %174 = vperm.xlu0 %2754, %v169_v16  }
  0x4e   :  { %141 = vperm.xlu1 %2751, %v130_v13   ;;  %2755 = vset.pattern.permute.xlu2 %v35_v2 }
  0x54   :  { %200 = vperm.xlu0 %2754, %v195_v17  }
  0x56   :  { %154 = vperm.xlu1 %2751, %v143_v14   ;;  %167 = vperm.xlu2 %2755, %v156_v15  }
  0x5c   :  { %2757 = vset.pattern.permute.xlu0 %v35_v2 }
  0x5e   :  { %180 = vperm.xlu1 %2751, %v169_v16   ;;  %2756 = vset.pattern.permute.xlu2 %v28_v1 }
  0x64   :  { %206 = vperm.xlu0 %2757, %v195_v17  }
  0x66   :  { %193 = vperm.xlu1 %2751, %v182_v18   ;;  %187 = vperm.xlu2 %2756, %v182_v18  }
  0x68   :  { %v51_v34 = vpop.permute.xlu2 %50 }
  0x69   :  { %vm239_vm2 = vcmp.eq.s32.totalorder %v51_v34, %v2849_v26 }
  0x6a   :  { %v2604_v40 = vsel %vm239_vm2, 1.0, %v2787_v28 }
  0x6e   :  { %219 = vperm.xlu1 %2751, %v208_v22   ;;  %213 = vperm.xlu2 %2756, %v208_v22  }
  0x70   :  { %v64_v43 = vpop.permute.xlu2 %63 }
  0x71   :  { %vm241_vm5 = vcmp.eq.s32.totalorder %v64_v43, %v2849_v26 }
  0x72   :  { %v2606_v46 = vsel %vm241_vm5, 1.0, %v2787_v28 }
  0x76   :  { %232 = vperm.xlu1 %2751, %v221_v25   ;;  %226 = vperm.xlu2 %2756, %v221_v25  }
  0x7e   :  { %v32_v27 = vpop.permute.xlu0 %31 }
  0x7f   :  { %vm236_vm0 = vcmp.eq.s32.totalorder %v32_v27, %v2849_v26 }
  0x80   :  { %v2601_v29 = vsel %vm236_vm0, 1.0, %v2787_v28  ;;  %v38_v30 = vpop.permute.xlu1 %37  ;;  %v84_v53 = vpop.permute.xlu2 %83 }
  0x81   :  { %v369_v31 = vrot.slane %v2601_v29, 2  ;;  %v370_v32 = vrot.slane %v2601_v29, 4  ;;  %v371_v33 = vrot.slane %v2601_v29, 6  ;;  %417 = vst [vmem:[#allocation1] ss:$4 sm:$0xff] %v2601_v29  ;;  %vm237_vm1 = vcmp.eq.s32.totalorder %v38_v30, %v2849_v26 }
  0x82   :  { %v2602_v35 = vsel %vm237_vm1, 1.0, %v2787_v28  ;;  %vm244_vm8 = vcmp.eq.s32.totalorder %v84_v53, %v2849_v26 }
  0x83   :  { %419 = vst [vmem:[#allocation1 + $0x1] ss:$4 sm:$0xff] %v369_v31  ;;  %v2609_v54 = vsel %vm244_vm8, 1.0, %v2787_v28 }
  0x84   :  { %421 = vst [vmem:[#allocation1 + $0x2] ss:$4 sm:$0xff] %v370_v32  ;;  %v381_v58 = vrot.slane %v2609_v54, 2  ;;  %v382_v59 = vrot.slane %v2609_v54, 4  ;;  %v383_v63 = vrot.slane %v2609_v54, 6 }
  0x85   :  { %423 = vst [vmem:[#allocation1 + $0x3] ss:$4 sm:$0xff] %v371_v33 }
  0x86   :  { %425 = vst [vmem:[#allocation1 + $0x20] ss:$4 sm:$0xff] %v2602_v35  ;;  %v45_v36 = vpop.permute.xlu0 %44 }
  0x87   :  { %vm238_vm3 = vcmp.eq.s32.totalorder %v45_v36, %v2849_v26 }
  0x88   :  { %v2603_v37 = vsel %vm238_vm3, 1.0, %v2787_v28  ;;  %v110_v2 = vpop.permute.xlu2 %109 }
  0x89   :  { %v372_v38 = vrot.slane %v2603_v37, 2  ;;  %v373_v39 = vrot.slane %v2603_v37, 4  ;;  %427 = vst [vmem:[#allocation1 + $0x21] ss:$4 sm:$0xff] %v2603_v37  ;;  %v374_v41 = vrot.slane %v2603_v37, 6  ;;  %vm248_vm10 = vcmp.eq.s32.totalorder %v110_v2, %v2849_v26 }
  0x8a   :  { %v2613_v3 = vsel %vm248_vm10, 1.0, %v2787_v28 }
  0x8b   :  { %429 = vst [vmem:[#allocation1 + $0x22] ss:$4 sm:$0xff] %v372_v38  ;;  %v387_v7 = vrot.slane %v2613_v3, 2  ;;  %v388_v25 = vrot.slane %v2613_v3, 4  ;;  %v389_v27 = vrot.slane %v2613_v3, 6 }
  0x8c   :  { %v432_v42 = vld.sshfl [vmem:[#allocation1] sm:$0xff pattern:$0x73625140]  ;;  %431 = vst [vmem:[#allocation1 + $0x23] ss:$4 sm:$0xff] %v373_v39 }
  0x8d   :  { %435 = vst [vmem:[#allocation1 + $0x1] ss:$4 sm:$0xff] %v2604_v40  ;;  %2633 = vmatmul.msk.f32.vlgmr.msra.gmra.mxu0 %vm524_vm4, %v432_v42 }
  0x8e   :  { %434 = vst [vmem:[#allocation1] ss:$4 sm:$0xff] %v374_v41  ;;  %v71_v44 = vpop.permute.xlu0 %70 }
  0x8f   :  { %vm242_vm6 = vcmp.eq.s32.totalorder %v71_v44, %v2849_v26 }
  0x90   :  { %v58_v45 = vpop.permute.xlu1 %57  ;;  %v2607_v50 = vsel %vm242_vm6, 1.0, %v2787_v28  ;;  %v123_v15 = vpop.permute.xlu2 %122 }
  0x91   :  { %vm240_vm7 = vcmp.eq.s32.totalorder %v58_v45, %v2849_v26  ;;  %v380_v55 = vrot.slane %v2607_v50, 6  ;;  %v378_v56 = vrot.slane %v2607_v50, 2  ;;  %v379_v60 = vrot.slane %v2607_v50, 4 }
  0x92   :  { %v2605_v47 = vsel %vm240_vm7, 1.0, %v2787_v28  ;;  %vm250_vm14 = vcmp.eq.s32.totalorder %v123_v15, %v2849_v26 }
  0x93   :  { %v433_v48 = vld.sshfl [vmem:[#allocation1 + $0x20] sm:$0xff pattern:$0x73625140]  ;;  %v375_v49 = vrot.slane %v2605_v47, 2  ;;  %v376_v51 = vrot.slane %v2605_v47, 4  ;;  %v377_v52 = vrot.slane %v2605_v47, 6 }
  0x94   :  { %440 = vst [vmem:[#allocation1 + $0x22] ss:$4 sm:$0xff] %v2606_v46  ;;  %v2615_v17 = vsel %vm250_vm14, 1.0, %v2787_v28 }
  0x95   :  { %441 = vst [vmem:[#allocation1 + $0x23] ss:$4 sm:$0xff] %v2607_v50  ;;  %2634 = vmatmul.msk.f32.gmra.mxu0 %vm524_vm4, %v433_v48  ;;  %v391_v19 = vrot.slane %v2615_v17, 4  ;;  %v390_v20 = vrot.slane %v2615_v17, 2  ;;  %v392_v22 = vrot.slane %v2615_v17, 6 }
  0x96   :  { %436 = vst [vmem:[#allocation1 + $0x2] ss:$4 sm:$0xff] %v2605_v47  ;;  %v97_v0 = vpop.permute.xlu0 %96 }
  0x97   :  { %437 = vst [vmem:[#allocation1 + $0x3] ss:$4 sm:$0xff] %v375_v49  ;;  %vm246_vm11 = vcmp.eq.s32.totalorder %v97_v0, %v2849_v26 }
  0x98   :  { %438 = vst [vmem:[#allocation1 + $0x20] ss:$4 sm:$0xff] %v376_v51  ;;  %v2611_v4 = vsel %vm246_vm11, 1.0, %v2787_v28  ;;  %v136_v23 = vpop.permute.xlu2 %135 }
  0x99   :  { %439 = vst [vmem:[#allocation1 + $0x21] ss:$4 sm:$0xff] %v377_v52  ;;  %v386_v8 = vrot.slane %v2611_v4, 6  ;;  %v385_v11 = vrot.slane %v2611_v4, 4  ;;  %v384_v12 = vrot.slane %v2611_v4, 2  ;;  %vm252_vm1 = vcmp.eq.s32.totalorder %v136_v23, %v2849_v26 }
  0x9a   :  { %v2617_v33 = vsel %vm252_vm1, 1.0, %v2787_v28 }
  0x9b   :  { %v393_v36 = vrot.slane %v2617_v33, 2  ;;  %v394_v38 = vrot.slane %v2617_v33, 4  ;;  %v395_v39 = vrot.slane %v2617_v33, 6 }
  0x9e   :  { %v442_v57 = vld.sshfl [vmem:[#allocation1] sm:$0xff pattern:$0x73625140] }
  0x9f   :  { %446 = vst [vmem:[#allocation1 + $0x2] ss:$4 sm:$0xff] %v380_v55  ;;  %2635 = vmatmul.msk.f32.gmra.mxu0 %vm524_vm4, %v442_v57 }
  0xa0   :  { %v443_v61 = vld.sshfl [vmem:[#allocation1 + $0x20] sm:$0xff pattern:$0x73625140]  ;;  %444 = vst [vmem:[#allocation1] ss:$4 sm:$0xff] %v378_v56  ;;  %v77_v62 = vpop.permute.xlu1 %76  ;;  %v162_v34 = vpop.permute.xlu2 %161 }
  0xa1   :  { %448 = vst [vmem:[#allocation1 + $0x20] ss:$4 sm:$0xff] %v2609_v54  ;;  %vm243_vm9 = vcmp.eq.s32.totalorder %v77_v62, %v2849_v26  ;;  %vm256_vm5 = vcmp.eq.s32.totalorder %v162_v34, %v2849_v26  ;;  %v2654_v34 = vld [vmem:[%s4412_s2 + $0x18] sm:$0xff] }
  0xa2   :  { %445 = vst [vmem:[#allocation1 + $0x1] ss:$4 sm:$0xff] %v379_v60  ;;  %v2608_v1 = vsel %vm243_vm9, 1.0, %v2787_v28  ;;  %v2621_v46 = vsel %vm256_vm5, 1.0, %v2787_v28  ;;  %1000 = vmatpush.msra.mxu1 %v2654_v34  ;;  %2739 = vmatpush.msra.mxu3 %v2654_v34 }
  0xa3   :  { %449 = vst [vmem:[#allocation1 + $0x21] ss:$4 sm:$0xff] %v381_v58  ;;  %v399_v49 = vrot.slane %v2621_v46, 2  ;;  %v400_v53 = vrot.slane %v2621_v46, 4  ;;  %v401_v54 = vrot.slane %v2621_v46, 6 }
  0xa4   :  { %450 = vst [vmem:[#allocation1 + $0x22] ss:$4 sm:$0xff] %v382_v59 }
  0xa5   :  { %451 = vst [vmem:[#allocation1 + $0x23] ss:$4 sm:$0xff] %v383_v63 }
  0xa6   :  { %447 = vst [vmem:[#allocation1 + $0x3] ss:$4 sm:$0xff] %v2608_v1  ;;  %v103_v6 = vpop.permute.xlu0 %102 }
  0xa7   :  { %2636 = vmatmul.msk.f32.gmra.mxu0 %vm524_vm4, %v443_v61  ;;  %vm247_vm12 = vcmp.eq.s32.totalorder %v103_v6, %v2849_v26 }
  0xa8   :  { %v90_v5 = vpop.permute.xlu1 %89  ;;  %v2612_v13 = vsel %vm247_vm12, 1.0, %v2787_v28 }
  0xa9   :  { %vm245_vm13 = vcmp.eq.s32.totalorder %v90_v5, %v2849_v26 }
  0xaa   :  { %v2610_v16 = vsel %vm245_vm13, 1.0, %v2787_v28 }
  0xac   :  { %v453_v9 = vld.sshfl [vmem:[#allocation1 + $0x20] sm:$0xff pattern:$0x73625140] }
  0xad   :  { %458 = vst [vmem:[#allocation1 + $0x20] ss:$4 sm:$0xff] %v386_v8  ;;  %v452_v10 = vld.sshfl [vmem:[#allocation1] sm:$0xff pattern:$0x73625140] }
  0xae   :  { %460 = vst [vmem:[#allocation1 + $0x22] ss:$4 sm:$0xff] %v2613_v3 }
  0xaf   :  { %461 = vst [vmem:[#allocation1 + $0x23] ss:$4 sm:$0xff] %v387_v7  ;;  %2637 = vmatmul.msk.f32.gmra.mxu0 %vm524_vm4, %v452_v10 }
  0xb0   :  { %457 = vst [vmem:[#allocation1 + $0x3] ss:$4 sm:$0xff] %v385_v11  ;;  %v116_v14 = vpop.permute.xlu1 %115  ;;  %v168_v45 = vpop.permute.xlu2 %167 }
  0xb1   :  { %455 = vst [vmem:[#allocation1 + $0x1] ss:$4 sm:$0xff] %v2611_v4  ;;  %vm249_vm15 = vcmp.eq.s32.totalorder %v116_v14, %v2849_v26  ;;  %vm257_vm7 = vcmp.eq.s32.totalorder %v168_v45, %v2849_v26 }
  0xb2   :  { %456 = vst [vmem:[#allocation1 + $0x2] ss:$4 sm:$0xff] %v384_v12  ;;  %v2614_v29 = vsel %vm249_vm15, 1.0, %v2787_v28  ;;  %v2622_v56 = vsel %vm257_vm7, 1.0, %v2787_v28 }
  0xb3   :  { %459 = vst [vmem:[#allocation1 + $0x21] ss:$4 sm:$0xff] %v2612_v13 }
  0xb4   :  { %454 = vst [vmem:[#allocation1] ss:$4 sm:$0xff] %v2610_v16 }
  0xb6   :  { %v149_v31 = vpop.permute.xlu0 %148 }
  0xb7   :  { %2638 = vmatmul.msk.f32.gmra.mxu0 %vm524_vm4, %v453_v9  ;;  %vm254_vm2 = vcmp.eq.s32.totalorder %v149_v31, %v2849_v26 }
  0xb8   :  { %v129_v18 = vpop.permute.xlu1 %128  ;;  %v2619_v35 = vsel %vm254_vm2, 1.0, %v2787_v28  ;;  %vm727_vm2 = vcmask 1040384  }
  0xb9   :  { %vm251_vm0 = vcmp.eq.s32.totalorder %v129_v18, %v2849_v26  ;;  %v396_v41 = vrot.slane %v2619_v35, 2  ;;  %v397_v42 = vrot.slane %v2619_v35, 4  ;;  %v398_v47 = vrot.slane %v2619_v35, 6 }
  0xba   :  { %v463_v21 = vld.sshfl [vmem:[#allocation1 + $0x20] sm:$0xff pattern:$0x73625140]  ;;  %v2616_v30 = vsel %vm251_vm0, 1.0, %v2787_v28 }
  0xbb   :  { %469 = vst [vmem:[#allocation1 + $0x21] ss:$4 sm:$0xff] %v391_v19  ;;  %v462_v24 = vld.sshfl [vmem:[#allocation1] sm:$0xff pattern:$0x73625140] }
  0xbc   :  { %468 = vst [vmem:[#allocation1 + $0x20] ss:$4 sm:$0xff] %v390_v20 }
  0xbd   :  { %470 = vst [vmem:[#allocation1 + $0x22] ss:$4 sm:$0xff] %v392_v22 }
  0xbe   :  { %464 = vst [vmem:[#allocation1] ss:$4 sm:$0xff] %v388_v25  ;;  %v175_v48 = vpop.permute.xlu0 %174 }
  0xbf   :  { %465 = vst [vmem:[#allocation1 + $0x1] ss:$4 sm:$0xff] %v389_v27  ;;  %2639 = vmatmul.msk.f32.gmra.mxu0 %vm524_vm4, %v462_v24  ;;  %vm258_vm8 = vcmp.eq.s32.totalorder %v175_v48, %v2849_v26 }
  0xc0   :  { %467 = vst [vmem:[#allocation1 + $0x3] ss:$4 sm:$0xff] %v2615_v17  ;;  %v142_v32 = vpop.permute.xlu1 %141  ;;  %v188_v57 = vpop.permute.xlu2 %187  ;;  %v2623_v58 = vsel %vm258_vm8, 1.0, %v2787_v28  ;;  %vm732_vm8 = vcmask 1046534  }
  0xc1   :  { %466 = vst [vmem:[#allocation1 + $0x2] ss:$4 sm:$0xff] %v2614_v29  ;;  %vm253_vm3 = vcmp.eq.s32.totalorder %v142_v32, %v2849_v26  ;;  %vm260_vm9 = vcmp.eq.s32.totalorder %v188_v57, %v2849_v26  ;;  %v402_v59 = vrot.slane %v2623_v58, 2  ;;  %v403_v60 = vrot.slane %v2623_v58, 4 }
  0xc2   :  { %471 = vst [vmem:[#allocation1 + $0x23] ss:$4 sm:$0xff] %v2616_v30  ;;  %v2618_v44 = vsel %vm253_vm3, 1.0, %v2787_v28  ;;  %v404_v61 = vrot.slane %v2623_v58, 6  ;;  %v2625_v62 = vsel %vm260_vm9, 1.0, %v2787_v28  ;;  %vm728_vm3 = vcmask 1042434  }
  0xc3   :  { %v405_v3 = vrot.slane %v2625_v62, 2  ;;  %v406_v4 = vrot.slane %v2625_v62, 4  ;;  %v407_v6 = vrot.slane %v2625_v62, 6  ;;  %vm729_vm5 = vmor %vm727_vm2, %vm728_vm3 }
  0xc6   :  { %v201_v0 = vpop.permute.xlu0 %200 }
  0xc7   :  { %2640 = vmatmul.msk.f32.gmra.mxu0 %vm524_vm4, %v463_v21  ;;  %vm262_vm11 = vcmp.eq.s32.totalorder %v201_v0, %v2849_v26 }
  0xc8   :  { %v472_v37 = vld.sshfl [vmem:[#allocation1] sm:$0xff pattern:$0x73625140]  ;;  %v155_v43 = vpop.permute.xlu1 %154  ;;  %v214_v7 = vpop.permute.xlu2 %213  ;;  %v2627_v8 = vsel %vm262_vm11, 1.0, %v2787_v28  ;;  %vm2534_vm11 = vcmask 1041409  }
  0xc9   :  { %474 = vst [vmem:[#allocation1] ss:$4 sm:$0xff] %v2617_v33  ;;  %v473_v40 = vld.sshfl [vmem:[#allocation1 + $0x20] sm:$0xff pattern:$0x73625140]  ;;  %vm255_vm6 = vcmp.eq.s32.totalorder %v155_v43, %v2849_v26  ;;  %vm264_vm12 = vcmp.eq.s32.totalorder %v214_v7, %v2849_v26  ;;  %v408_v9 = vrot.slane %v2627_v8, 2 }
  0xca   :  { %475 = vst [vmem:[#allocation1 + $0x1] ss:$4 sm:$0xff] %v393_v36  ;;  %v2620_v51 = vsel %vm255_vm6, 1.0, %v2787_v28  ;;  %v409_v10 = vrot.slane %v2627_v8, 4  ;;  %v2629_v13 = vsel %vm264_vm12, 1.0, %v2787_v28  ;;  %v410_v15 = vrot.slane %v2627_v8, 6 }
  0xcb   :  { %476 = vst [vmem:[#allocation1 + $0x2] ss:$4 sm:$0xff] %v394_v38  ;;  %v411_v17 = vrot.slane %v2629_v13, 2  ;;  %v412_v21 = vrot.slane %v2629_v13, 4  ;;  %v413_v22 = vrot.slane %v2629_v13, 6  ;;  %vm730_vm6 = vcmask 1044484  }
  0xcc   :  { %477 = vst [vmem:[#allocation1 + $0x3] ss:$4 sm:$0xff] %v395_v39  ;;  %vm731_vm7 = vmor %vm729_vm5, %vm730_vm6  ;;  %vm2537_vm12 = vcmask 1043459  }
  0xcd   :  { %479 = vst [vmem:[#allocation1 + $0x21] ss:$4 sm:$0xff] %v2619_v35  ;;  %vm2951_vm9 = vmor %vm731_vm7, %vm732_vm8 }
  0xce   :  { %480 = vst [vmem:[#allocation1 + $0x22] ss:$4 sm:$0xff] %v396_v41 }
  0xcf   :  { %481 = vst [vmem:[#allocation1 + $0x23] ss:$4 sm:$0xff] %v397_v42  ;;  %2641 = vmatmul.msk.f32.gmra.mxu0 %vm524_vm4, %v472_v37 }
  0xd0   :  { %478 = vst [vmem:[#allocation1 + $0x20] ss:$4 sm:$0xff] %v2618_v44  ;;  %v181_v52 = vpop.permute.xlu1 %180  ;;  %v227_v20 = vpop.permute.xlu2 %226 }
  0xd1   :  { %vm259_vm10 = vcmp.eq.s32.totalorder %v181_v52, %v2849_v26  ;;  %vm266_vm15 = vcmp.eq.s32.totalorder %v227_v20, %v2849_v26 }
  0xd2   :  { %v2624_v1 = vsel %vm259_vm10, 1.0, %v2787_v28  ;;  %v2631_v25 = vsel %vm266_vm15, 1.0, %v2787_v28  ;;  %vm961_vm10 = vcmask 130048   ;;  %vm2552_vm15 = vcmask 785408  }
  0xd3   :  { %v482_v50 = vld.sshfl [vmem:[#allocation1] sm:$0xff pattern:$0x73625140]  ;;  %v414_v27 = vrot.slane %v2631_v25, 2  ;;  %v415_v30 = vrot.slane %v2631_v25, 4  ;;  %v416_v31 = vrot.slane %v2631_v25, 6 }
  0xd4   :  { %486 = vst [vmem:[#allocation1 + $0x2] ss:$4 sm:$0xff] %v2621_v46 }
  0xd5   :  { %487 = vst [vmem:[#allocation1 + $0x3] ss:$4 sm:$0xff] %v399_v49 }
  0xd6   :  { %484 = vst [vmem:[#allocation1] ss:$4 sm:$0xff] %v398_v47  ;;  %v207_v11 = vpop.permute.xlu0 %206 }
  0xd7   :  { %v483_v55 = vld.sshfl [vmem:[#allocation1 + $0x20] sm:$0xff pattern:$0x73625140]  ;;  %485 = vst [vmem:[#allocation1 + $0x1] ss:$4 sm:$0xff] %v2620_v51  ;;  %2642 = vmatmul.msk.f32.gmra.mxu0 %vm524_vm4, %v473_v40  ;;  %vm263_vm14 = vcmp.eq.s32.totalorder %v207_v11, %v2849_v26 }
  0xd8   :  { %488 = vst [vmem:[#allocation1 + $0x20] ss:$4 sm:$0xff] %v400_v53  ;;  %v194_v2 = vpop.permute.xlu1 %193  ;;  %v2628_v19 = vsel %vm263_vm14, 1.0, %v2787_v28  ;;  %vm2543_vm14 = vcmask 1047559  }
  0xd9   :  { %489 = vst [vmem:[#allocation1 + $0x21] ss:$4 sm:$0xff] %v401_v54  ;;  %vm261_vm13 = vcmp.eq.s32.totalorder %v194_v2, %v2849_v26 }
  0xda   :  { %490 = vst [vmem:[#allocation1 + $0x22] ss:$4 sm:$0xff] %v2622_v56  ;;  %v2626_v16 = vsel %vm261_vm13, 1.0, %v2787_v28  ;;  %vm2540_vm13 = vcmask 1045509  }
  0xdb   :  { %491 = vst [vmem:[#allocation1 + $0x23] ss:$4 sm:$0xff] %v2623_v58 }
  0xde   :  { %v492_v63 = vld.sshfl [vmem:[#allocation1] sm:$0xff pattern:$0x73625140] }
  0xdf   :  { %494 = vst [vmem:[#allocation1] ss:$4 sm:$0xff] %v402_v59  ;;  %2643 = vmatmul.msk.f32.gmra.mxu0 %vm524_vm4, %v482_v50 }
  0xe0   :  { %495 = vst [vmem:[#allocation1 + $0x1] ss:$4 sm:$0xff] %v403_v60  ;;  %v220_v14 = vpop.permute.xlu1 %219 }
  0xe1   :  { %496 = vst [vmem:[#allocation1 + $0x2] ss:$4 sm:$0xff] %v404_v61  ;;  %vm265_vm0 = vcmp.eq.s32.totalorder %v220_v14, %v2849_v26 }
  0xe2   :  { %v493_v5 = vld.sshfl [vmem:[#allocation1 + $0x20] sm:$0xff pattern:$0x73625140]  ;;  %497 = vst [vmem:[#allocation1 + $0x3] ss:$4 sm:$0xff] %v2624_v1  ;;  %v2630_v29 = vsel %vm265_vm0, 1.0, %v2787_v28 }
  0xe3   :  { %498 = vst [vmem:[#allocation1 + $0x20] ss:$4 sm:$0xff] %v2625_v62  ;;  %vm2580_vm0 = vcmask 261120  }
  0xe4   :  { %499 = vst [vmem:[#allocation1 + $0x21] ss:$4 sm:$0xff] %v405_v3 }
  0xe5   :  { %500 = vst [vmem:[#allocation1 + $0x22] ss:$4 sm:$0xff] %v406_v4 }
  0xe6   :  { %501 = vst [vmem:[#allocation1 + $0x23] ss:$4 sm:$0xff] %v407_v6 }
  0xe7   :  { %2644 = vmatmul.msk.f32.gmra.mxu0 %vm524_vm4, %v483_v55 }
  0xe8   :  { %v233_v23 = vpop.permute.xlu1 %232 }
  0xe9   :  { %v502_v12 = vld.sshfl [vmem:[#allocation1] sm:$0xff pattern:$0x73625140]  ;;  %vm267_vm1 = vcmp.eq.s32.totalorder %v233_v23, %v2849_v26  ;;  %v2653_v26 = vld [vmem:[%s4412_s2 + $0x10] sm:$0xff] }
  0xea   :  { %505 = vst [vmem:[#allocation1 + $0x1] ss:$4 sm:$0xff] %v2627_v8  ;;  %v2632_v33 = vsel %vm267_vm1, 1.0, %v2787_v28  ;;  %1001 = vmatpush.msra.mxu1 %v2653_v26  ;;  %2740 = vmatpush.msra.mxu3 %v2653_v26 }
  0xeb   :  { %506 = vst [vmem:[#allocation1 + $0x2] ss:$4 sm:$0xff] %v408_v9 }
  0xec   :  { %507 = vst [vmem:[#allocation1 + $0x3] ss:$4 sm:$0xff] %v409_v10 }
  0xed   :  { %v503_v18 = vld.sshfl [vmem:[#allocation1 + $0x20] sm:$0xff pattern:$0x73625140]  ;;  %504 = vst [vmem:[#allocation1] ss:$4 sm:$0xff] %v2626_v16 }
  0xee   :  { %508 = vst [vmem:[#allocation1 + $0x20] ss:$4 sm:$0xff] %v410_v15 }
  0xef   :  { %510 = vst [vmem:[#allocation1 + $0x22] ss:$4 sm:$0xff] %v2629_v13  ;;  %2645 = vmatmul.msk.f32.gmra.mxu0 %vm524_vm4, %v492_v63 }
  0xf0   :  { %511 = vst [vmem:[#allocation1 + $0x23] ss:$4 sm:$0xff] %v411_v17 }
  0xf1   :  { %509 = vst [vmem:[#allocation1 + $0x21] ss:$4 sm:$0xff] %v2628_v19 }
  0xf4   :  { %v512_v24 = vld.sshfl [vmem:[#allocation1] sm:$0xff pattern:$0x73625140] }
  0xf5   :  { %514 = vst [vmem:[#allocation1] ss:$4 sm:$0xff] %v412_v21 }
  0xf6   :  { %515 = vst [vmem:[#allocation1 + $0x1] ss:$4 sm:$0xff] %v413_v22 }
  0xf7   :  { %517 = vst [vmem:[#allocation1 + $0x3] ss:$4 sm:$0xff] %v2631_v25  ;;  %2646 = vmatmul.msk.f32.gmra.mxu0 %vm524_vm4, %v493_v5 }
  0xf8   :  { %v513_v32 = vld.sshfl [vmem:[#allocation1 + $0x20] sm:$0xff pattern:$0x73625140]  ;;  %516 = vst [vmem:[#allocation1 + $0x2] ss:$4 sm:$0xff] %v2630_v29 }
  0xf9   :  { %518 = vst [vmem:[#allocation1 + $0x20] ss:$4 sm:$0xff] %v414_v27 }
  0xfa   :  { %519 = vst [vmem:[#allocation1 + $0x21] ss:$4 sm:$0xff] %v415_v30 }
  0xfb   :  { %520 = vst [vmem:[#allocation1 + $0x22] ss:$4 sm:$0xff] %v416_v31 }
  0xfc   :  { %521 = vst [vmem:[#allocation1 + $0x23] ss:$4 sm:$0xff] %v2632_v33 }
  0xff   :  { %2647 = vmatmul.msk.f32.gmra.mxu0 %vm524_vm4, %v502_v12  ;;  %v522_v42 = vld.sshfl [vmem:[#allocation1] sm:$0xff pattern:$0x73625140] }
 0x103   :  { %v523_v58 = vld.sshfl [vmem:[#allocation1 + $0x20] sm:$0xff pattern:$0x73625140] }
 0x107   :  { %2648 = vmatmul.msk.f32.gmra.mxu0 %vm524_vm4, %v503_v18 }
 0x10a   :  { %v2939_v28 = vpop.f32.mrf.mxu0 }
 0x10b   :  { %v2942_v35 = vrot.slane %v2939_v28, 2  ;;  %v2945_v36 = vrot.slane %v2939_v28, 4  ;;  %v2948_v37 = vrot.slane %v2939_v28, 6  ;;  %v2655_v39 = vrot.slane %v2939_v28, 9 }
 0x10d   :  { %v736_v40 = vrot.slane %v2942_v35, 7  ;;  %v739_v41 = vrot.slane %v2945_v36, 7  ;;  %v4424_v46 = vrot.slane %v2948_v37, 7 }
 0x10f   :  { %v737_v43 = vsel %vm2951_vm9, %v2655_v39, %v736_v40  ;;  %v738_v44 = vrot.slane %v736_v40, 2  ;;  %v741_v45 = vrot.slane %v739_v41, 2  ;;  %2649 = vmatmul.msk.f32.gmra.mxu0 %vm524_vm4, %v512_v24 }
 0x110   :  { %894 = vst [vmem:[#allocation1] ss:$4 sm:$0xff] %v737_v43 }
 0x111   :  { %v2964_v47 = vsel %vm2951_vm9, %v738_v44, %v739_v41  ;;  %v2970_v48 = vsel %vm2951_vm9, %v741_v45, %v4424_v46 }
 0x112   :  { %4491 = vst [vmem:[#allocation5_spill] sm:$0xff] %v2964_v47  ;;  %v2973_v49 = vpop.f32.mrf.mxu0 }
 0x113   :  { %4492 = vst [vmem:[#allocation6_spill] sm:$0xff] %v2970_v48  ;;  %v4432_v50 = vrot.slane %v2973_v49, 2  ;;  %v2978_v51 = vrot.slane %v2973_v49, 4  ;;  %v2981_v52 = vrot.slane %v2973_v49, 6 }
 0x114   :  { %896 = vst [vmem:[#allocation1 + $0x1] ss:$4 sm:$0xff] %v2964_v47 }
 0x115   :  { %4493 = vst [vmem:[#allocation7_spill] sm:$0xff] %v2973_v49  ;;  %v2656_v53 = vrot.slane %v4432_v50, 9  ;;  %v746_v54 = vrot.slane %v2978_v51, 7  ;;  %v749_v57 = vrot.slane %v2981_v52, 7 }
 0x116   :  { %898 = vst [vmem:[#allocation1 + $0x2] ss:$4 sm:$0xff] %v2970_v48 }
 0x117   :  { %v747_v55 = vsel %vm2951_vm9, %v2656_v53, %v746_v54  ;;  %v748_v56 = vrot.slane %v746_v54, 2  ;;  %2650 = vmatmul.msk.f32.gmra.mxu0 %vm524_vm4, %v513_v32  ;;  %v751_v61 = vrot.slane %v749_v57, 2 }
 0x118   :  { %900 = vst [vmem:[#allocation1 + $0x3] ss:$4 sm:$0xff] %v747_v55 }
 0x119   :  { %v2992_v59 = vsel %vm2951_vm9, %v748_v56, %v749_v57 }
 0x11a   :  { %4494 = vst [vmem:[#allocation8_spill] sm:$0xff] %v2992_v59 }
 0x11b   :  { %902 = vst [vmem:[#allocation1 + $0x20] ss:$4 sm:$0xff] %v2992_v59 }
 0x11c   :  { %v2995_v60 = vpop.f32.mrf.mxu0 }
 0x11d   :  { %v4428_v62 = vrot.slane %v2995_v60, 4  ;;  %v2999_v63 = vrot.slane %v2995_v60, 6  ;;  %v4420_v0 = vrot.slane %v2995_v60, 7  ;;  %v4589_v38 = vrot.slane %v2995_v60, 2 }
 0x11f   :  { %v909_v1 = vld.sshfl [vmem:[#allocation1] sm:$0xff pattern:$0x73625140]  ;;  %v3006_v2 = vsel %vm2951_vm9, %v751_v61, %v4420_v0  ;;  %v2657_v3 = vrot.slane %v4428_v62, 9  ;;  %v756_v4 = vrot.slane %v2999_v63, 7  ;;  %2651 = vmatmul.msk.f32.gmra.mxu0 %vm524_vm4, %v522_v42 }
 0x120   :  { %4495 = vst [vmem:[#allocation9_spill] sm:$0xff] %v3006_v2  ;;  %2671 = vmatmul.msk.f32.vlgmr.msra.gmra.mxu1 %vm961_vm10, %v909_v1 }
 0x121   :  { %904 = vst [vmem:[#allocation1 + $0x21] ss:$4 sm:$0xff] %v3006_v2  ;;  %v757_v5 = vsel %vm2951_vm9, %v2657_v3, %v756_v4  ;;  %v758_v7 = vrot.slane %v756_v4, 2 }
 0x122   :  { %906 = vst [vmem:[#allocation1 + $0x22] ss:$4 sm:$0xff] %v757_v5 }
 0x124   :  { %v3016_v6 = vpop.f32.mrf.mxu0 }
 0x125   :  { %v3019_v8 = vrot.slane %v3016_v6, 2  ;;  %v759_v9 = vrot.slane %v3016_v6, 7  ;;  %v4430_v13 = vrot.slane %v3016_v6, 6 }
 0x127   :  { %v3024_v10 = vsel %vm2951_vm9, %v758_v7, %v759_v9  ;;  %v761_v11 = vrot.slane %v759_v9, 2  ;;  %v4423_v12 = vrot.slane %v3019_v8, 7  ;;  %2652 = vmatmul.msk.f32.gmra.mxu0 %vm524_vm4, %v523_v58  ;;  %v2658_v16 = vrot.slane %v4430_v13, 9 }
 0x128   :  { %4496 = vst [vmem:[#allocation10_spill] sm:$0xff] %v3024_v10  ;;  %vm2389_vm4 = vcmask 783360  }
 0x129   :  { %908 = vst [vmem:[#allocation1 + $0x23] ss:$4 sm:$0xff] %v3024_v10  ;;  %v3034_v14 = vsel %vm2951_vm9, %v761_v11, %v4423_v12 }
 0x12a   :  { %4497 = vst [vmem:[#allocation11_spill] sm:$0xff] %v3034_v14 }
 0x12b   :  { %911 = vst [vmem:[#allocation1] ss:$4 sm:$0xff] %v3034_v14 }
 0x12c   :  { %v3037_v15 = vpop.f32.mrf.mxu0 }
 0x12d   :  { %v3042_v17 = vrot.slane %v3037_v15, 2  ;;  %v3045_v18 = vrot.slane %v3037_v15, 4  ;;  %v766_v19 = vrot.slane %v3037_v15, 7 }
 0x12f   :  { %v767_v21 = vsel %vm2951_vm9, %v2658_v16, %v766_v19  ;;  %v768_v22 = vrot.slane %v766_v19, 2  ;;  %v769_v23 = vrot.slane %v3042_v17, 7  ;;  %v4422_v27 = vrot.slane %v3045_v18, 7 }
 0x130   :  { %v910_v20 = vld.sshfl [vmem:[#allocation1 + $0x20] sm:$0xff pattern:$0x73625140]  ;;  %912 = vst [vmem:[#allocation1 + $0x1] ss:$4 sm:$0xff] %v767_v21 }
 0x131   :  { %2672 = vmatmul.msk.f32.gmra.mxu1 %vm961_vm10, %v910_v20  ;;  %v3054_v24 = vsel %vm2951_vm9, %v768_v22, %v769_v23  ;;  %v771_v25 = vrot.slane %v769_v23, 2 }
 0x132   :  { %4498 = vst [vmem:[#allocation12_spill] sm:$0xff] %v3054_v24 }
 0x133   :  { %913 = vst [vmem:[#allocation1 + $0x2] ss:$4 sm:$0xff] %v3054_v24  ;;  %v3062_v29 = vsel %vm2951_vm9, %v771_v25, %v4422_v27 }
 0x134   :  { %4499 = vst [vmem:[#allocation13_spill] sm:$0xff] %v3062_v29  ;;  %v3065_v30 = vpop.f32.mrf.mxu0 }
 0x135   :  { %914 = vst [vmem:[#allocation1 + $0x3] ss:$4 sm:$0xff] %v3062_v29  ;;  %v3068_v31 = vrot.slane %v3065_v30, 2  ;;  %v3071_v32 = vrot.slane %v3065_v30, 4  ;;  %v3074_v33 = vrot.slane %v3065_v30, 6  ;;  %v2659_v34 = vrot.slane %v3065_v30, 9 }
 0x137   :  { %v776_v26 = vrot.slane %v3068_v31, 7  ;;  %v779_v39 = vrot.slane %v3071_v32, 7  ;;  %v4418_v43 = vrot.slane %v3074_v33, 7 }
 0x139   :  { %v777_v40 = vsel %vm2951_vm9, %v2659_v34, %v776_v26  ;;  %v778_v41 = vrot.slane %v776_v26, 2  ;;  %v781_v42 = vrot.slane %v779_v39, 2 }
 0x13a   :  { %915 = vst [vmem:[#allocation1 + $0x20] ss:$4 sm:$0xff] %v777_v40 }
 0x13b   :  { %v3084_v45 = vsel %vm2951_vm9, %v778_v41, %v779_v39  ;;  %v3090_v53 = vsel %vm2951_vm9, %v781_v42, %v4418_v43 }
 0x13c   :  { %v919_v44 = vld.sshfl [vmem:[#allocation1] sm:$0xff pattern:$0x73625140]  ;;  %4500 = vst [vmem:[#allocation14_spill] sm:$0xff] %v3084_v45  ;;  %v3093_v54 = vpop.f32.mrf.mxu0 }
 0x13d   :  { %4501 = vst [vmem:[#allocation15_spill] sm:$0xff] %v3090_v53  ;;  %2673 = vmatmul.msk.f32.gmra.mxu1 %vm961_vm10, %v919_v44  ;;  %v4426_v55 = vrot.slane %v3093_v54, 2  ;;  %v3099_v56 = vrot.slane %v3093_v54, 4  ;;  %v3102_v57 = vrot.slane %v3093_v54, 6 }
 0x13e   :  { %916 = vst [vmem:[#allocation1 + $0x21] ss:$4 sm:$0xff] %v3084_v45 }
 0x13f   :  { %917 = vst [vmem:[#allocation1 + $0x22] ss:$4 sm:$0xff] %v3090_v53  ;;  %v2660_v58 = vrot.slane %v4426_v55, 9  ;;  %v786_v61 = vrot.slane %v3099_v56, 7  ;;  %v789_v4 = vrot.slane %v3102_v57, 7 }
 0x141   :  { %v787_v1 = vsel %vm2951_vm9, %v2660_v58, %v786_v61  ;;  %v788_v3 = vrot.slane %v786_v61, 2  ;;  %v791_v9 = vrot.slane %v789_v4, 2 }
 0x142   :  { %918 = vst [vmem:[#allocation1 + $0x23] ss:$4 sm:$0xff] %v787_v1 }
 0x143   :  { %v3112_v5 = vsel %vm2951_vm9, %v788_v3, %v789_v4 }
 0x144   :  { %4502 = vst [vmem:[#allocation16_spill] sm:$0xff] %v3112_v5  ;;  %v3115_v7 = vpop.f32.mrf.mxu0 }
 0x145   :  { %921 = vst [vmem:[#allocation1] ss:$4 sm:$0xff] %v3112_v5  ;;  %v4429_v11 = vrot.slane %v3115_v7, 4  ;;  %v3119_v16 = vrot.slane %v3115_v7, 6  ;;  %v4421_v19 = vrot.slane %v3115_v7, 7 }
 0x147   :  { %v3126_v20 = vsel %vm2951_vm9, %v791_v9, %v4421_v19  ;;  %v2661_v21 = vrot.slane %v4429_v11, 9  ;;  %v796_v22 = vrot.slane %v3119_v16, 7 }
 0x148   :  { %4503 = vst [vmem:[#allocation17_spill] sm:$0xff] %v3126_v20 }
 0x149   :  { %922 = vst [vmem:[#allocation1 + $0x1] ss:$4 sm:$0xff] %v3126_v20  ;;  %v920_v23 = vld.sshfl [vmem:[#allocation1 + $0x20] sm:$0xff pattern:$0x73625140]  ;;  %v797_v25 = vsel %vm2951_vm9, %v2661_v21, %v796_v22  ;;  %v798_v26 = vrot.slane %v796_v22, 2 }
 0x14a   :  { %923 = vst [vmem:[#allocation1 + $0x2] ss:$4 sm:$0xff] %v797_v25  ;;  %2674 = vmatmul.msk.f32.gmra.mxu1 %vm961_vm10, %v920_v23 }
 0x14c   :  { %v3135_v34 = vpop.f32.mrf.mxu0 }
 0x14d   :  { %v3138_v39 = vrot.slane %v3135_v34, 2  ;;  %v799_v40 = vrot.slane %v3135_v34, 7  ;;  %v4425_v58 = vrot.slane %v3135_v34, 6 }
 0x14f   :  { %v3143_v41 = vsel %vm2951_vm9, %v798_v26, %v799_v40  ;;  %v801_v42 = vrot.slane %v799_v40, 2  ;;  %v4417_v44 = vrot.slane %v3138_v39, 7  ;;  %v2662_v3 = vrot.slane %v4425_v58, 9 }
 0x150   :  { %4504 = vst [vmem:[#allocation18_spill] sm:$0xff] %v3143_v41 }
 0x151   :  { %924 = vst [vmem:[#allocation1 + $0x3] ss:$4 sm:$0xff] %v3143_v41  ;;  %v3152_v61 = vsel %vm2951_vm9, %v801_v42, %v4417_v44 }
 0x152   :  { %4505 = vst [vmem:[#allocation19_spill] sm:$0xff] %v3152_v61 }
 0x153   :  { %925 = vst [vmem:[#allocation1 + $0x20] ss:$4 sm:$0xff] %v3152_v61 }
 0x154   :  { %v3155_v1 = vpop.f32.mrf.mxu0 }
 0x155   :  { %v3160_v4 = vrot.slane %v3155_v1, 2  ;;  %v3163_v9 = vrot.slane %v3155_v1, 4  ;;  %v806_v21 = vrot.slane %v3155_v1, 7 }
 0x157   :  { %v807_v23 = vsel %vm2951_vm9, %v2662_v3, %v806_v21  ;;  %v808_v25 = vrot.slane %v806_v21, 2  ;;  %v809_v26 = vrot.slane %v3160_v4, 7  ;;  %v4419_v44 = vrot.slane %v3163_v9, 7 }
 0x158   :  { %v929_v22 = vld.sshfl [vmem:[#allocation1] sm:$0xff pattern:$0x73625140]  ;;  %926 = vst [vmem:[#allocation1 + $0x21] ss:$4 sm:$0xff] %v807_v23 }
 0x159   :  { %2675 = vmatmul.msk.f32.gmra.mxu1 %vm961_vm10, %v929_v22  ;;  %v3172_v40 = vsel %vm2951_vm9, %v808_v25, %v809_v26  ;;  %v811_v42 = vrot.slane %v809_v26, 2 }
 0x15a   :  { %4506 = vst [vmem:[#allocation20_spill] sm:$0xff] %v3172_v40 }
 0x15b   :  { %927 = vst [vmem:[#allocation1 + $0x22] ss:$4 sm:$0xff] %v3172_v40  ;;  %v3180_v3 = vsel %vm2951_vm9, %v811_v42, %v4419_v44 }
 0x15c   :  { %4507 = vst [vmem:[#allocation21_spill] sm:$0xff] %v3180_v3  ;;  %v3183_v21 = vpop.f32.mrf.mxu0 }
 0x15d   :  { %928 = vst [vmem:[#allocation1 + $0x23] ss:$4 sm:$0xff] %v3180_v3  ;;  %v3186_v22 = vrot.slane %v3183_v21, 2  ;;  %v3189_v23 = vrot.slane %v3183_v21, 4  ;;  %v3192_v25 = vrot.slane %v3183_v21, 6  ;;  %v2663_v26 = vrot.slane %v3183_v21, 9 }
 0x15f   :  { %v816_v43 = vrot.slane %v3186_v22, 7  ;;  %v819_v42 = vrot.slane %v3189_v23, 7  ;;  %v4427_v27 = vrot.slane %v3192_v25, 7 }
 0x161   :  { %v817_v44 = vsel %vm2951_vm9, %v2663_v26, %v816_v43  ;;  %v818_v0 = vrot.slane %v816_v43, 2  ;;  %v821_v19 = vrot.slane %v819_v42, 2 }
 0x162   :  { %931 = vst [vmem:[#allocation1] ss:$4 sm:$0xff] %v817_v44 }
 0x163   :  { %v3202_v46 = vsel %vm2951_vm9, %v818_v0, %v819_v42  ;;  %v3208_v58 = vsel %vm2951_vm9, %v821_v19, %v4427_v27 }
 0x164   :  { %v930_v12 = vld.sshfl [vmem:[#allocation1 + $0x20] sm:$0xff pattern:$0x73625140]  ;;  %4508 = vst [vmem:[#allocation22_spill] sm:$0xff] %v3202_v46  ;;  %v3211_v55 = vpop.f32.mrf.mxu0 }
 0x165   :  { %4509 = vst [vmem:[#allocation23_spill] sm:$0xff] %v3208_v58  ;;  %2676 = vmatmul.msk.f32.gmra.mxu1 %vm961_vm10, %v930_v12  ;;  %v4431_v43 = vrot.slane %v3211_v55, 2  ;;  %v3217_v44 = vrot.slane %v3211_v55, 4  ;;  %v3220_v0 = vrot.slane %v3211_v55, 6 }
 0x166   :  { %932 = vst [vmem:[#allocation1 + $0x1] ss:$4 sm:$0xff] %v3202_v46 }
 0x167   :  { %933 = vst [vmem:[#allocation1 + $0x2] ss:$4 sm:$0xff] %v3208_v58  ;;  %v2664_v19 = vrot.slane %v4431_v43, 9  ;;  %v826_v26 = vrot.slane %v3217_v44, 7  ;;  %v829_v12 = vrot.slane %v3220_v0, 7 }
 0x169   :  { %v827_v42 = vsel %vm2951_vm9, %v2664_v19, %v826_v26  ;;  %v828_v27 = vrot.slane %v826_v26, 2  ;;  %v831_v13 = vrot.slane %v829_v12, 2 }
 0x16a   :  { %934 = vst [vmem:[#allocation1 + $0x3] ss:$4 sm:$0xff] %v827_v42 }
 0x16b   :  { %v3230_v62 = vsel %vm2951_vm9, %v828_v27, %v829_v12 }
 0x16c   :  { %4510 = vst [vmem:[#allocation24_spill] sm:$0xff] %v3230_v62  ;;  %v3233_v11 = vpop.f32.mrf.mxu0 }
 0x16d   :  { %935 = vst [vmem:[#allocation1 + $0x20] ss:$4 sm:$0xff] %v3230_v62  ;;  %v4437_v43 = vrot.slane %v3233_v11, 4  ;;  %v3237_v50 = vrot.slane %v3233_v11, 6  ;;  %v4436_v19 = vrot.slane %v3233_v11, 7 }
 0x16f   :  { %v3244_v26 = vsel %vm2951_vm9, %v831_v13, %v4436_v19  ;;  %v2665_v27 = vrot.slane %v4437_v43, 9  ;;  %v836_v42 = vrot.slane %v3237_v50, 7 }
 0x170   :  { %4511 = vst [vmem:[#allocation25_spill] sm:$0xff] %v3244_v26 }
 0x171   :  { %936 = vst [vmem:[#allocation1 + $0x21] ss:$4 sm:$0xff] %v3244_v26  ;;  %v939_v12 = vld.sshfl [vmem:[#allocation1] sm:$0xff pattern:$0x73625140]  ;;  %v837_v3 = vsel %vm2951_vm9, %v2665_v27, %v836_v42  ;;  %v838_v5 = vrot.slane %v836_v42, 2 }
 0x172   :  { %937 = vst [vmem:[#allocation1 + $0x22] ss:$4 sm:$0xff] %v837_v3  ;;  %2677 = vmatmul.msk.f32.gmra.mxu1 %vm961_vm10, %v939_v12 }
 0x174   :  { %v3253_v40 = vpop.f32.mrf.mxu0 }
 0x175   :  { %v3256_v13 = vrot.slane %v3253_v40, 2  ;;  %v839_v19 = vrot.slane %v3253_v40, 7  ;;  %v4444_v3 = vrot.slane %v3253_v40, 6 }
 0x177   :  { %v3261_v43 = vsel %vm2951_vm9, %v838_v5, %v839_v19  ;;  %v841_v26 = vrot.slane %v839_v19, 2  ;;  %v4442_v53 = vrot.slane %v3256_v13, 7  ;;  %v2666_v5 = vrot.slane %v4444_v3, 9 }
 0x178   :  { %4512 = vst [vmem:[#allocation26_spill] sm:$0xff] %v3261_v43 }
 0x179   :  { %938 = vst [vmem:[#allocation1 + $0x23] ss:$4 sm:$0xff] %v3261_v43  ;;  %v3270_v27 = vsel %vm2951_vm9, %v841_v26, %v4442_v53 }
 0x17a   :  { %4513 = vst [vmem:[#allocation27_spill] sm:$0xff] %v3270_v27 }
 0x17b   :  { %941 = vst [vmem:[#allocation1] ss:$4 sm:$0xff] %v3270_v27 }
 0x17c   :  { %v3273_v42 = vpop.f32.mrf.mxu0 }
 0x17d   :  { %v3278_v19 = vrot.slane %v3273_v42, 2  ;;  %v3281_v12 = vrot.slane %v3273_v42, 4  ;;  %v846_v43 = vrot.slane %v3273_v42, 7 }
 0x17f   :  { %v847_v26 = vsel %vm2951_vm9, %v2666_v5, %v846_v43  ;;  %v848_v53 = vrot.slane %v846_v43, 2  ;;  %v849_v27 = vrot.slane %v3278_v19, 7  ;;  %v4448_v10 = vrot.slane %v3281_v12, 7 }
 0x180   :  { %v940_v45 = vld.sshfl [vmem:[#allocation1 + $0x20] sm:$0xff pattern:$0x73625140]  ;;  %942 = vst [vmem:[#allocation1 + $0x1] ss:$4 sm:$0xff] %v847_v26 }
 0x181   :  { %2678 = vmatmul.msk.f32.gmra.mxu1 %vm961_vm10, %v940_v45  ;;  %v3290_v3 = vsel %vm2951_vm9, %v848_v53, %v849_v27  ;;  %v851_v14 = vrot.slane %v849_v27, 2 }
 0x182   :  { %4514 = vst [vmem:[#allocation28_spill] sm:$0xff] %v3290_v3 }
 0x183   :  { %943 = vst [vmem:[#allocation1 + $0x2] ss:$4 sm:$0xff] %v3290_v3  ;;  %v3298_v5 = vsel %vm2951_vm9, %v851_v14, %v4448_v10 }
 0x184   :  { %4515 = vst [vmem:[#allocation29_spill] sm:$0xff] %v3298_v5  ;;  %v3301_v43 = vpop.f32.mrf.mxu0 }
 0x185   :  { %944 = vst [vmem:[#allocation1 + $0x3] ss:$4 sm:$0xff] %v3298_v5  ;;  %v3304_v45 = vrot.slane %v3301_v43, 2  ;;  %v3307_v53 = vrot.slane %v3301_v43, 4  ;;  %v3310_v27 = vrot.slane %v3301_v43, 6  ;;  %v2667_v26 = vrot.slane %v3301_v43, 9 }
 0x187   :  { %4516 = vst [vmem:[#allocation30_spill] sm:$0xff] %v3310_v27  ;;  %v856_v3 = vrot.slane %v3304_v45, 7  ;;  %v859_v14 = vrot.slane %v3307_v53, 7  ;;  %v4456_v62 = vrot.slane %v3310_v27, 7 }
 0x189   :  { %v857_v10 = vsel %vm2951_vm9, %v2667_v26, %v856_v3  ;;  %v858_v5 = vrot.slane %v856_v3, 2  ;;  %v861_v2 = vrot.slane %v859_v14, 2 }
 0x18a   :  { %945 = vst [vmem:[#allocation1 + $0x20] ss:$4 sm:$0xff] %v857_v10 }
 0x18b   :  { %v3320_v46 = vsel %vm2951_vm9, %v858_v5, %v859_v14  ;;  %v3326_v61 = vsel %vm2951_vm9, %v861_v2, %v4456_v62 }
 0x18c   :  { %v949_v58 = vld.sshfl [vmem:[#allocation1] sm:$0xff pattern:$0x73625140]  ;;  %4517 = vst [vmem:[#allocation31_spill] sm:$0xff] %v3320_v46  ;;  %v3329_v41 = vpop.f32.mrf.mxu0 }
 0x18d   :  { %4518 = vst [vmem:[#allocation32_spill] sm:$0xff] %v3326_v61  ;;  %2679 = vmatmul.msk.f32.gmra.mxu1 %vm961_vm10, %v949_v58  ;;  %v4460_v10 = vrot.slane %v3329_v41, 2  ;;  %v3335_v3 = vrot.slane %v3329_v41, 4  ;;  %v3338_v5 = vrot.slane %v3329_v41, 6 }
 0x18e   :  { %946 = vst [vmem:[#allocation1 + $0x21] ss:$4 sm:$0xff] %v3320_v46 }
 0x18f   :  { %947 = vst [vmem:[#allocation1 + $0x22] ss:$4 sm:$0xff] %v3326_v61  ;;  %v2668_v2 = vrot.slane %v4460_v10, 9  ;;  %v866_v26 = vrot.slane %v3335_v3, 7  ;;  %v869_v58 = vrot.slane %v3338_v5, 7 }
 0x191   :  { %v867_v14 = vsel %vm2951_vm9, %v2668_v2, %v866_v26  ;;  %v868_v62 = vrot.slane %v866_v26, 2  ;;  %v871_v20 = vrot.slane %v869_v58, 2 }
 0x192   :  { %948 = vst [vmem:[#allocation1 + $0x23] ss:$4 sm:$0xff] %v867_v14 }
 0x193   :  { %v3348_v61 = vsel %vm2951_vm9, %v868_v62, %v869_v58 }
 0x194   :  { %4519 = vst [vmem:[#allocation33_spill] sm:$0xff] %v3348_v61  ;;  %v3351_v46 = vpop.f32.mrf.mxu0 }
 0x195   :  { %951 = vst [vmem:[#allocation1] ss:$4 sm:$0xff] %v3348_v61  ;;  %v4467_v10 = vrot.slane %v3351_v46, 4  ;;  %v3355_v27 = vrot.slane %v3351_v46, 6  ;;  %v4466_v2 = vrot.slane %v3351_v46, 7 }
 0x197   :  { %v3362_v26 = vsel %vm2951_vm9, %v871_v20, %v4466_v2  ;;  %v2669_v62 = vrot.slane %v4467_v10, 9  ;;  %v876_v14 = vrot.slane %v3355_v27, 7 }
 0x198   :  { %4520 = vst [vmem:[#allocation34_spill] sm:$0xff] %v3362_v26 }
 0x199   :  { %952 = vst [vmem:[#allocation1 + $0x1] ss:$4 sm:$0xff] %v3362_v26  ;;  %v950_v58 = vld.sshfl [vmem:[#allocation1 + $0x20] sm:$0xff pattern:$0x73625140]  ;;  %v877_v61 = vsel %vm2951_vm9, %v2669_v62, %v876_v14  ;;  %v878_v24 = vrot.slane %v876_v14, 2 }
 0x19a   :  { %953 = vst [vmem:[#allocation1 + $0x2] ss:$4 sm:$0xff] %v877_v61  ;;  %2680 = vmatmul.msk.f32.vlgmr.msra.gmra.mxu3 %vm961_vm10, %v950_v58 }
 0x19c   :  { %v3371_v29 = vpop.f32.mrf.mxu0 }
 0x19d   :  { %v3374_v20 = vrot.slane %v3371_v29, 2  ;;  %v879_v2 = vrot.slane %v3371_v29, 7 }
 0x19f   :  { %4521 = vst [vmem:[#allocation35_spill] sm:$0xff] %v3374_v20  ;;  %v3379_v10 = vsel %vm2951_vm9, %v878_v24, %v879_v2  ;;  %v881_v26 = vrot.slane %v879_v2, 2  ;;  %v4470_v59 = vrot.slane %v3374_v20, 7  ;;  %v4524_v24 = vrot.slane %v2973_v49, 2 }
 0x1a0   :  { %4522 = vst [vmem:[#allocation36_spill] sm:$0xff] %v3379_v10 }
 0x1a1   :  { %954 = vst [vmem:[#allocation1 + $0x3] ss:$4 sm:$0xff] %v3379_v10  ;;  %v3387_v61 = vsel %vm2951_vm9, %v881_v26, %v4470_v59  ;;  %v4525_v26 = vrot.slane %v3016_v6, 6 }
 0x1a2   :  { %4523 = vst [vmem:[#allocation37_spill] sm:$0xff] %v3387_v61 }
 0x1a3   :  { %955 = vst [vmem:[#allocation1 + $0x20] ss:$4 sm:$0xff] %v3387_v61  ;;  %v4526_v61 = vrot.slane %v3115_v7, 4 }
 0x1a4   :  { %v3404_v58 = vpop.f32.mrf.mxu0 }
 0x1a5   :  { %v886_v59 = vrot.slane %v3404_v58, 7 }
 0x1a7   :  { %v888_v20 = vrot.slane %v886_v59, 2 }
 0x1a8   :  { %v959_v62 = vld.sshfl [vmem:[#allocation1] sm:$0xff pattern:$0x73625140] }
 0x1a9   :  { %1039 = vst [vmem:[#allocation1] ss:$4 sm:$0xff] %v2939_v28  ;;  %2681 = vmatmul.msk.f32.gmra.mxu3 %vm961_vm10, %v959_v62  ;;  %v4477_v28 = vrot.slane %v3371_v29, 6  ;;  %v3408_v62 = vrot.slane %v3404_v58, 2 }
 0x1aa   :  { %1041 = vst [vmem:[#allocation1 + $0x1] ss:$4 sm:$0xff] %v2942_v35 }
 0x1ab   :  { %1043 = vst [vmem:[#allocation1 + $0x2] ss:$4 sm:$0xff] %v2945_v36  ;;  %v889_v48 = vrot.slane %v3408_v62, 7 }
 0x1ac   :  { %1045 = vst [vmem:[#allocation1 + $0x3] ss:$4 sm:$0xff] %v4524_v24  ;;  %v3411_v24 = vrot.slane %v3404_v58, 4 }
 0x1ad   :  { %v3425_v47 = vsel %vm2951_vm9, %v888_v20, %v889_v48  ;;  %v4528_v20 = vrot.slane %v2995_v60, 4 }
 0x1ae   :  { %v4480_v49 = vrot.slane %v3411_v24, 7  ;;  %957 = vst [vmem:[#allocation1 + $0x22] ss:$4 sm:$0xff] %v3425_v47 }
 0x1b3   :  { %v1054_v2 = vld.sshfl [vmem:[#allocation1] sm:$0xff pattern:$0x73625140] }
 0x1b4   :  { %1056 = vst [vmem:[#allocation1] ss:$4 sm:$0xff] %v3016_v6 }
 0x1b5   :  { %1057 = vst [vmem:[#allocation1 + $0x1] ss:$4 sm:$0xff] %v4525_v26  ;;  %v2670_v26 = vrot.slane %v4477_v28, 9  ;;  %v891_v28 = vrot.slane %v889_v48, 2  ;;  %v4527_v48 = vrot.slane %v3211_v55, 2 }
 0x1b6   :  { %1058 = vst [vmem:[#allocation1 + $0x2] ss:$4 sm:$0xff] %v3037_v15 }
 0x1b7   :  { %1059 = vst [vmem:[#allocation1 + $0x3] ss:$4 sm:$0xff] %v3042_v17  ;;  %v887_v10 = vsel %vm2951_vm9, %v2670_v26, %v886_v59 }
 0x1b8   :  { %956 = vst [vmem:[#allocation1 + $0x21] ss:$4 sm:$0xff] %v887_v10 }
 0x1be   :  { %v3402_v14 = vld.sshfl [vmem:[#allocation1] sm:$0xff pattern:$0x73625140] }
 0x1bf   :  { %1066 = vst [vmem:[#allocation1] ss:$4 sm:$0xff] %v3099_v56 }
 0x1c0   :  { %1067 = vst [vmem:[#allocation1 + $0x1] ss:$4 sm:$0xff] %v3102_v57 }
 0x1c1   :  { %1068 = vst [vmem:[#allocation1 + $0x2] ss:$4 sm:$0xff] %v4526_v61  ;;  %v3433_v61 = vsel %vm2951_vm9, %v891_v28, %v4480_v49  ;;  %v4529_v28 = vrot.slane %v3253_v40, 6 }
 0x1c2   :  { %1069 = vst [vmem:[#allocation1 + $0x3] ss:$4 sm:$0xff] %v3119_v16 }
 0x1c3   :  { %958 = vst [vmem:[#allocation1 + $0x23] ss:$4 sm:$0xff] %v3433_v61 }
 0x1c9   :  { %v3436_v59 = vld.sshfl [vmem:[#allocation1] sm:$0xff pattern:$0x73625140] }
 0x1ca   :  { %1076 = vst [vmem:[#allocation1] ss:$4 sm:$0xff] %v3183_v21  ;;  %v960_v10 = vld.sshfl [vmem:[#allocation1 + $0x20] sm:$0xff pattern:$0x73625140] }
 0x1cb   :  { %1077 = vst [vmem:[#allocation1 + $0x1] ss:$4 sm:$0xff] %v3186_v22  ;;  %2682 = vmatmul.msk.f32.gmra.mxu3 %vm961_vm10, %v960_v10 }
 0x1cc   :  { %1078 = vst [vmem:[#allocation1 + $0x2] ss:$4 sm:$0xff] %v3189_v23 }
 0x1cd   :  { %1079 = vst [vmem:[#allocation1 + $0x3] ss:$4 sm:$0xff] %v4527_v48  ;;  %v4530_v48 = vrot.slane %v3093_v54, 2 }
 0x1ce   :  { %1047 = vst [vmem:[#allocation1 + $0x20] ss:$4 sm:$0xff] %v2978_v51 }
 0x1cf   :  { %1049 = vst [vmem:[#allocation1 + $0x21] ss:$4 sm:$0xff] %v2981_v52 }
 0x1d0   :  { %1051 = vst [vmem:[#allocation1 + $0x22] ss:$4 sm:$0xff] %v4528_v20  ;;  %v723_v20 = vld [vmem:[%s4412_s2 + $0x8] sm:$0xff] }
 0x1d1   :  { %1053 = vst [vmem:[#allocation1 + $0x23] ss:$4 sm:$0xff] %v2999_v63  ;;  %1144 = vmatpush.msra.mxu2 %v723_v20  ;;  %2741 = vmatpush.msrb.mxu3 %v723_v20  ;;  %v4532_v20 = vrot.slane %v3135_v34, 6 }
 0x1d4   :  { %v3449_v21 = vld.sshfl [vmem:[#allocation1] sm:$0xff pattern:$0x73625140] }
 0x1d5   :  { %1086 = vst [vmem:[#allocation1] ss:$4 sm:$0xff] %v3253_v40 }
 0x1d6   :  { %1087 = vst [vmem:[#allocation1 + $0x1] ss:$4 sm:$0xff] %v4529_v28  ;;  %v4531_v28 = vrot.slane %v3351_v46, 4 }
 0x1d7   :  { %1088 = vst [vmem:[#allocation1 + $0x2] ss:$4 sm:$0xff] %v3273_v42 }
 0x1d8   :  { %1089 = vst [vmem:[#allocation1 + $0x3] ss:$4 sm:$0xff] %v3278_v19  ;;  %v1055_v26 = vld.sshfl [vmem:[#allocation1 + $0x20] sm:$0xff pattern:$0x73625140] }
 0x1d9   :  { %1060 = vst [vmem:[#allocation1 + $0x20] ss:$4 sm:$0xff] %v3065_v30  ;;  %v722_v30 = vld [vmem:[%s4412_s2] sm:$0xff] }
 0x1da   :  { %1061 = vst [vmem:[#allocation1 + $0x21] ss:$4 sm:$0xff] %v3068_v31  ;;  %1145 = vmatpush.msra.mxu2 %v722_v30  ;;  %2742 = vmatpush.msrb.mxu3 %v722_v30  ;;  %v4533_v30 = vrot.slane %v3233_v11, 4 }
 0x1db   :  { %1062 = vst [vmem:[#allocation1 + $0x22] ss:$4 sm:$0xff] %v3071_v32  ;;  %2683 = vmatmul.msk.f32.vlgmr.msra.gmra.mxu2 %vm961_vm10, %v1054_v2 }
 0x1dc   :  { %1063 = vst [vmem:[#allocation1 + $0x23] ss:$4 sm:$0xff] %v4530_v48 }
 0x1df   :  { %v3461_v10 = vld.sshfl [vmem:[#allocation1] sm:$0xff pattern:$0x73625140] }
 0x1e0   :  { %1096 = vst [vmem:[#allocation1] ss:$4 sm:$0xff] %v3335_v3 }
 0x1e1   :  { %1097 = vst [vmem:[#allocation1 + $0x1] ss:$4 sm:$0xff] %v3338_v5 }
 0x1e2   :  { %1098 = vst [vmem:[#allocation1 + $0x2] ss:$4 sm:$0xff] %v4531_v28  ;;  %v4535_v28 = vrot.slane %v3371_v29, 6 }
 0x1e3   :  { %1099 = vst [vmem:[#allocation1 + $0x3] ss:$4 sm:$0xff] %v3355_v27  ;;  %v1065_v48 = vld.sshfl [vmem:[#allocation1 + $0x20] sm:$0xff pattern:$0x73625140]  ;;  %2684 = vmatmul.msk.f32.gmra.mxu2 %vm961_vm10, %v1055_v26 }
 0x1e4   :  { %1070 = vst [vmem:[#allocation1 + $0x20] ss:$4 sm:$0xff] %v3135_v34 }
 0x1e5   :  { %1071 = vst [vmem:[#allocation1 + $0x21] ss:$4 sm:$0xff] %v4532_v20 }
 0x1e6   :  { %1072 = vst [vmem:[#allocation1 + $0x22] ss:$4 sm:$0xff] %v3155_v1 }
 0x1e7   :  { %1073 = vst [vmem:[#allocation1 + $0x23] ss:$4 sm:$0xff] %v3160_v4 }
 0x1ea   :  { %v1104_v49 = vld.sshfl [vmem:[#allocation1] sm:$0xff pattern:$0x73625140] }
 0x1eb   :  { %1270 = vst [vmem:[#allocation1] ss:$4 sm:$0xff] %v2942_v35  ;;  %2685 = vmatmul.msk.f32.gmra.mxu2 %vm961_vm10, %v3402_v14  ;;  %v4534_v14 = vrot.slane %v3329_v41, 2 }
 0x1ec   :  { %1272 = vst [vmem:[#allocation1 + $0x1] ss:$4 sm:$0xff] %v2945_v36 }
 0x1ed   :  { %1274 = vst [vmem:[#allocation1 + $0x2] ss:$4 sm:$0xff] %v2948_v37 }
 0x1ee   :  { %1276 = vst [vmem:[#allocation1 + $0x3] ss:$4 sm:$0xff] %v2978_v51  ;;  %v1075_v2 = vld.sshfl [vmem:[#allocation1 + $0x20] sm:$0xff pattern:$0x73625140] }
 0x1ef   :  { %1080 = vst [vmem:[#allocation1 + $0x20] ss:$4 sm:$0xff] %v3217_v44 }
 0x1f0   :  { %1081 = vst [vmem:[#allocation1 + $0x21] ss:$4 sm:$0xff] %v3220_v0 }
 0x1f1   :  { %1082 = vst [vmem:[#allocation1 + $0x22] ss:$4 sm:$0xff] %v4533_v30 }
 0x1f2   :  { %1083 = vst [vmem:[#allocation1 + $0x23] ss:$4 sm:$0xff] %v3237_v50 }
 0x1f3   :  { %2686 = vmatmul.msk.f32.gmra.mxu2 %vm961_vm10, %v1065_v48 }
 0x1f5   :  { %v1285_v35 = vld.sshfl [vmem:[#allocation1] sm:$0xff pattern:$0x73625140] }
 0x1f6   :  { %1287 = vst [vmem:[#allocation1] ss:$4 sm:$0xff] %v3019_v8 }
 0x1f7   :  { %1288 = vst [vmem:[#allocation1 + $0x1] ss:$4 sm:$0xff] %v3037_v15 }
 0x1f8   :  { %1289 = vst [vmem:[#allocation1 + $0x2] ss:$4 sm:$0xff] %v3042_v17 }
 0x1f9   :  { %1290 = vst [vmem:[#allocation1 + $0x3] ss:$4 sm:$0xff] %v3045_v18  ;;  %v1085_v51 = vld.sshfl [vmem:[#allocation1 + $0x20] sm:$0xff pattern:$0x73625140] }
 0x1fa   :  { %1090 = vst [vmem:[#allocation1 + $0x20] ss:$4 sm:$0xff] %v3301_v43 }
 0x1fb   :  { %1091 = vst [vmem:[#allocation1 + $0x21] ss:$4 sm:$0xff] %v3304_v45  ;;  %2687 = vmatmul.msk.f32.gmra.mxu2 %vm961_vm10, %v3436_v59 }
 0x1fc   :  { %1092 = vst [vmem:[#allocation1 + $0x22] ss:$4 sm:$0xff] %v3307_v53 }
 0x1fd   :  { %1093 = vst [vmem:[#allocation1 + $0x23] ss:$4 sm:$0xff] %v4534_v14 }
 0x200   :  { %v3502_v26 = vld.sshfl [vmem:[#allocation1] sm:$0xff pattern:$0x73625140] }
 0x201   :  { %1297 = vst [vmem:[#allocation1] ss:$4 sm:$0xff] %v3102_v57 }
 0x202   :  { %1298 = vst [vmem:[#allocation1 + $0x1] ss:$4 sm:$0xff] %v3115_v7 }
 0x203   :  { %1299 = vst [vmem:[#allocation1 + $0x2] ss:$4 sm:$0xff] %v3119_v16  ;;  %2688 = vmatmul.msk.f32.gmra.mxu2 %vm961_vm10, %v1075_v2  ;;  %v4538_v2 = vld [vmem:[#allocation5_spill] sm:$0xff] }
 0x204   :  { %1300 = vst [vmem:[#allocation1 + $0x3] ss:$4 sm:$0xff] %v3135_v34  ;;  %v1095_v43 = vld.sshfl [vmem:[#allocation1 + $0x20] sm:$0xff pattern:$0x73625140] }
 0x205   :  { %1100 = vst [vmem:[#allocation1 + $0x20] ss:$4 sm:$0xff] %v3371_v29  ;;  %2692 = vmatmul.msk.f32.vlgmr.msrb.gmra.mxu3 %vm961_vm10, %v1095_v43  ;;  %v4485_v43 = vrot.slane %v3016_v6, 4 }
 0x206   :  { %1101 = vst [vmem:[#allocation1 + $0x21] ss:$4 sm:$0xff] %v4535_v28  ;;  %v4541_v28 = vrot.slane %v3019_v8, 7 }
 0x207   :  { %1102 = vst [vmem:[#allocation1 + $0x22] ss:$4 sm:$0xff] %v3404_v58 }
 0x208   :  { %1103 = vst [vmem:[#allocation1 + $0x23] ss:$4 sm:$0xff] %v3408_v62 }
 0x20b   :  { %v3516_v48 = vld.sshfl [vmem:[#allocation1] sm:$0xff pattern:$0x73625140]  ;;  %2689 = vmatmul.msk.f32.gmra.mxu2 %vm961_vm10, %v3449_v21  ;;  %v4537_v21 = vrot.slane %v2948_v37, 7 }
 0x20c   :  { %1307 = vst [vmem:[#allocation1] ss:$4 sm:$0xff] %v3186_v22 }
 0x20d   :  { %1308 = vst [vmem:[#allocation1 + $0x1] ss:$4 sm:$0xff] %v3189_v23  ;;  %2693 = vmatmul.msk.f32.gmra.mxu3 %vm961_vm10, %v1104_v49 }
 0x20e   :  { %1309 = vst [vmem:[#allocation1 + $0x2] ss:$4 sm:$0xff] %v3192_v25 }
 0x20f   :  { %1310 = vst [vmem:[#allocation1 + $0x3] ss:$4 sm:$0xff] %v3217_v44  ;;  %v1105_v16 = vld.sshfl [vmem:[#allocation1 + $0x20] sm:$0xff pattern:$0x73625140]  ;;  %v2696_v44 = vld [vmem:[%s4412_s2 + $0x28] sm:$0xff] }
 0x210   :  { %1278 = vst [vmem:[#allocation1 + $0x20] ss:$4 sm:$0xff] %v2981_v52  ;;  %1375 = vmatpush.msra.mxu3 %v2696_v44  ;;  %v4482_v44 = vrot.slane %v3037_v15, 6 }
 0x211   :  { %1280 = vst [vmem:[#allocation1 + $0x21] ss:$4 sm:$0xff] %v2995_v60 }
 0x212   :  { %1282 = vst [vmem:[#allocation1 + $0x22] ss:$4 sm:$0xff] %v2999_v63 }
 0x213   :  { %1284 = vst [vmem:[#allocation1 + $0x23] ss:$4 sm:$0xff] %v3016_v6  ;;  %2690 = vmatmul.msk.f32.gmra.mxu2 %vm961_vm10, %v1085_v51  ;;  %v4539_v51 = vld [vmem:[#allocation6_spill] sm:$0xff] }
 0x215   :  { %2694 = vmatmul.msk.f32.gmra.mxu3 %vm961_vm10, %v1105_v16  ;;  %v1555_v16 = vrot.slane %v4541_v28, 2 }
 0x216   :  { %v3531_v22 = vld.sshfl [vmem:[#allocation1] sm:$0xff pattern:$0x73625140] }
 0x217   :  { %1317 = vst [vmem:[#allocation1] ss:$4 sm:$0xff] %v3256_v13 }
 0x218   :  { %1318 = vst [vmem:[#allocation1 + $0x1] ss:$4 sm:$0xff] %v3273_v42 }
 0x219   :  { %1319 = vst [vmem:[#allocation1 + $0x2] ss:$4 sm:$0xff] %v3278_v19 }
 0x21a   :  { %1320 = vst [vmem:[#allocation1 + $0x3] ss:$4 sm:$0xff] %v3281_v12  ;;  %v1286_v49 = vld.sshfl [vmem:[#allocation1 + $0x20] sm:$0xff pattern:$0x73625140] }
 0x21b   :  { %1291 = vst [vmem:[#allocation1 + $0x20] ss:$4 sm:$0xff] %v3068_v31  ;;  %2691 = vmatmul.msk.f32.gmra.mxu2 %vm961_vm10, %v3461_v10  ;;  %v1549_v10 = vrot.slane %v4537_v21, 2 }
 0x21c   :  { %1292 = vst [vmem:[#allocation1 + $0x21] ss:$4 sm:$0xff] %v3071_v32 }
 0x21d   :  { %1293 = vst [vmem:[#allocation1 + $0x22] ss:$4 sm:$0xff] %v3074_v33 }
 0x21e   :  { %1294 = vst [vmem:[#allocation1 + $0x23] ss:$4 sm:$0xff] %v3099_v56  ;;  %v2695_v56 = vld [vmem:[%s4412_s2 + $0x20] sm:$0xff] }
 0x21f   :  { %1376 = vmatpush.msra.mxu3 %v2695_v56  ;;  %v4542_v56 = vrot.slane %v3045_v18, 7 }
 0x220   :  { %2697 = vmatmul.msk.f32.vlgmr.msra.gmra.mxu3 %vm961_vm10, %v1285_v35  ;;  %v4540_v35 = vld [vmem:[#allocation8_spill] sm:$0xff] }
 0x221   :  { %v3542_v63 = vld.sshfl [vmem:[#allocation1] sm:$0xff pattern:$0x73625140] }
 0x222   :  { %1327 = vst [vmem:[#allocation1] ss:$4 sm:$0xff] %v3338_v5 }
 0x223   :  { %1328 = vst [vmem:[#allocation1 + $0x1] ss:$4 sm:$0xff] %v3351_v46 }
 0x224   :  { %1329 = vst [vmem:[#allocation1 + $0x2] ss:$4 sm:$0xff] %v3355_v27  ;;  %v4536_v27 = vld [vmem:[#allocation7_spill] sm:$0xff] }
 0x225   :  { %1330 = vst [vmem:[#allocation1 + $0x3] ss:$4 sm:$0xff] %v3371_v29  ;;  %v1296_v31 = vld.sshfl [vmem:[#allocation1 + $0x20] sm:$0xff pattern:$0x73625140]  ;;  %v1550_v59 = vrot.slane %v4536_v27, 7 }
 0x226   :  { %1301 = vst [vmem:[#allocation1 + $0x20] ss:$4 sm:$0xff] %v3138_v39 }
 0x227   :  { %1302 = vst [vmem:[#allocation1 + $0x21] ss:$4 sm:$0xff] %v3155_v1  ;;  %v1551_v30 = vsel %vm2951_vm9, %v1549_v10, %v1550_v59  ;;  %v1558_v59 = vrot.slane %v4542_v56, 2 }
 0x228   :  { %1303 = vst [vmem:[#allocation1 + $0x22] ss:$4 sm:$0xff] %v3160_v4  ;;  %2698 = vmatmul.msk.f32.gmra.mxu3 %vm961_vm10, %v1286_v49  ;;  %v1556_v49 = vrot.slane %v4485_v43, 7  ;;  %v4564_v43 = vld [vmem:[#allocation14_spill] sm:$0xff] }
 0x229   :  { %1304 = vst [vmem:[#allocation1 + $0x23] ss:$4 sm:$0xff] %v3163_v9 }
 0x22a   :  { %v1557_v21 = vsel %vm2951_vm9, %v1555_v16, %v1556_v49  ;;  %v4546_v16 = vrot.slane %v3115_v7, 7 }
 0x22c   :  { %v3564_v20 = vld.sshfl [vmem:[#allocation1] sm:$0xff pattern:$0x73625140]  ;;  %v1564_v49 = vrot.slane %v4546_v16, 2  ;;  %v4483_v16 = vrot.slane %v2995_v60, 2 }
 0x22d   :  { %1597 = vst [vmem:[#allocation1] ss:$4 sm:$0xff] %v4538_v2  ;;  %v4543_v2 = vld [vmem:[#allocation12_spill] sm:$0xff] }
 0x22e   :  { %1599 = vst [vmem:[#allocation1 + $0x1] ss:$4 sm:$0xff] %v4539_v51  ;;  %v4544_v51 = vld [vmem:[#allocation13_spill] sm:$0xff] }
 0x22f   :  { %1601 = vst [vmem:[#allocation1 + $0x2] ss:$4 sm:$0xff] %v1551_v30 }
 0x230   :  { %1603 = vst [vmem:[#allocation1 + $0x3] ss:$4 sm:$0xff] %v4540_v35  ;;  %v1306_v14 = vld.sshfl [vmem:[#allocation1 + $0x20] sm:$0xff pattern:$0x73625140]  ;;  %2699 = vmatmul.msk.f32.gmra.mxu3 %vm961_vm10, %v3502_v26  ;;  %v4481_v35 = vrot.slane %v3115_v7, 2 }
 0x231   :  { %1311 = vst [vmem:[#allocation1 + $0x20] ss:$4 sm:$0xff] %v3220_v0  ;;  %v4545_v26 = vld [vmem:[#allocation30_spill] sm:$0xff] }
 0x232   :  { %1312 = vst [vmem:[#allocation1 + $0x21] ss:$4 sm:$0xff] %v3233_v11  ;;  %v1565_v56 = vrot.slane %v4481_v35, 7  ;;  %v4555_v35 = vld [vmem:[#allocation24_spill] sm:$0xff] }
 0x233   :  { %1313 = vst [vmem:[#allocation1 + $0x22] ss:$4 sm:$0xff] %v3237_v50  ;;  %v1559_v50 = vrot.slane %v4482_v44, 7  ;;  %v4484_v44 = vrot.slane %v3253_v40, 4 }
 0x234   :  { %1314 = vst [vmem:[#allocation1 + $0x23] ss:$4 sm:$0xff] %v3253_v40 }
 0x235   :  { %v1560_v30 = vsel %vm2951_vm9, %v1558_v59, %v1559_v50  ;;  %v2710_v59 = vld [vmem:[%s4412_s2 + $0x38] sm:$0xff]  ;;  %v1566_v50 = vsel %vm2951_vm9, %v1564_v49, %v1565_v56  ;;  %v4551_v49 = vrot.slane %v3192_v25, 7 }
 0x236   :  { %1702 = vmatpush.msrb.mxu1 %v2710_v59 }
 0x237   :  { %v1612_v10 = vld.sshfl [vmem:[#allocation1] sm:$0xff pattern:$0x73625140]  ;;  %v1573_v56 = vrot.slane %v4551_v49, 2 }
 0x238   :  { %1614 = vst [vmem:[#allocation1] ss:$4 sm:$0xff] %v1557_v21  ;;  %2700 = vmatmul.msk.f32.gmra.mxu3 %vm961_vm10, %v1296_v31 }
 0x239   :  { %1615 = vst [vmem:[#allocation1 + $0x1] ss:$4 sm:$0xff] %v4543_v2  ;;  %v4547_v2 = vld [vmem:[#allocation17_spill] sm:$0xff] }
 0x23a   :  { %1616 = vst [vmem:[#allocation1 + $0x2] ss:$4 sm:$0xff] %v4544_v51  ;;  %v4550_v51 = vld [vmem:[#allocation35_spill] sm:$0xff] }
 0x23b   :  { %1617 = vst [vmem:[#allocation1 + $0x3] ss:$4 sm:$0xff] %v1560_v30  ;;  %v3595_v28 = vld.sshfl [vmem:[#allocation1 + $0x20] sm:$0xff pattern:$0x73625140]  ;;  %v4549_v30 = vld [vmem:[#allocation19_spill] sm:$0xff] }
 0x23c   :  { %1321 = vst [vmem:[#allocation1 + $0x20] ss:$4 sm:$0xff] %v3304_v45  ;;  %v2709_v45 = vld [vmem:[%s4412_s2 + $0x30] sm:$0xff] }
 0x23d   :  { %1322 = vst [vmem:[#allocation1 + $0x21] ss:$4 sm:$0xff] %v3307_v53  ;;  %1703 = vmatpush.msrb.mxu1 %v2709_v45  ;;  %v4552_v45 = vrot.slane %v2995_v60, 7 }
 0x23e   :  { %1323 = vst [vmem:[#allocation1 + $0x22] ss:$4 sm:$0xff] %v4545_v26  ;;  %2711 = vmatmul.msk.f32.vlgmr.msrb.gmra.mxu1 %vm961_vm10, %v1612_v10  ;;  %v1574_v10 = vrot.slane %v3211_v55, 7 }
 0x23f   :  { %1324 = vst [vmem:[#allocation1 + $0x23] ss:$4 sm:$0xff] %v3335_v3  ;;  %v4548_v3 = vld [vmem:[#allocation18_spill] sm:$0xff] }
 0x240   :  { %2701 = vmatmul.msk.f32.gmra.mxu3 %vm961_vm10, %v3516_v48  ;;  %v1553_v48 = vrot.slane %v4483_v16, 7  ;;  %v4556_v16 = vld [vmem:[#allocation9_spill] sm:$0xff] }
 0x242   :  { %v3612_v21 = vld.sshfl [vmem:[#allocation1] sm:$0xff pattern:$0x73625140] }
 0x243   :  { %1624 = vst [vmem:[#allocation1] ss:$4 sm:$0xff] %v4547_v2  ;;  %v4553_v2 = vld [vmem:[#allocation22_spill] sm:$0xff] }
 0x244   :  { %1625 = vst [vmem:[#allocation1 + $0x1] ss:$4 sm:$0xff] %v1566_v50  ;;  %v1552_v50 = vrot.slane %v4552_v45, 2 }
 0x245   :  { %1626 = vst [vmem:[#allocation1 + $0x2] ss:$4 sm:$0xff] %v4548_v3  ;;  %v1575_v3 = vsel %vm2951_vm9, %v1573_v56, %v1574_v10  ;;  %v4558_v56 = vld [vmem:[#allocation10_spill] sm:$0xff] }
 0x246   :  { %1627 = vst [vmem:[#allocation1 + $0x3] ss:$4 sm:$0xff] %v4549_v30  ;;  %v3620_v31 = vld.sshfl [vmem:[#allocation1 + $0x20] sm:$0xff pattern:$0x73625140]  ;;  %v4554_v30 = vld [vmem:[#allocation23_spill] sm:$0xff]  ;;  %v1554_v45 = vsel %vm2951_vm9, %v1552_v50, %v1553_v48 }
 0x247   :  { %1331 = vst [vmem:[#allocation1 + $0x20] ss:$4 sm:$0xff] %v4550_v51 }
 0x248   :  { %1332 = vst [vmem:[#allocation1 + $0x21] ss:$4 sm:$0xff] %v3404_v58  ;;  %2702 = vmatmul.msk.f32.gmra.mxu3 %vm961_vm10, %v1306_v14  ;;  %v4487_v14 = vrot.slane %v3273_v42, 6 }
 0x249   :  { %1333 = vst [vmem:[#allocation1 + $0x22] ss:$4 sm:$0xff] %v3408_v62 }
 0x24a   :  { %1334 = vst [vmem:[#allocation1 + $0x23] ss:$4 sm:$0xff] %v3411_v24 }
 0x24d   :  { %v3632_v59 = vld.sshfl [vmem:[#allocation1] sm:$0xff pattern:$0x73625140] }
 0x24e   :  { %1634 = vst [vmem:[#allocation1] ss:$4 sm:$0xff] %v4553_v2  ;;  %v4557_v2 = vrot.slane %v3256_v13, 7 }
 0x24f   :  { %1635 = vst [vmem:[#allocation1 + $0x1] ss:$4 sm:$0xff] %v4554_v30  ;;  %v4560_v30 = vrot.slane %v3281_v12, 7 }
 0x250   :  { %1636 = vst [vmem:[#allocation1 + $0x2] ss:$4 sm:$0xff] %v1575_v3  ;;  %v1579_v10 = vrot.slane %v4557_v2, 2  ;;  %v4559_v3 = vld [vmem:[#allocation11_spill] sm:$0xff]  ;;  %2703 = vmatmul.msk.f32.gmra.mxu3 %vm961_vm10, %v3531_v22  ;;  %v1562_v2 = vrot.slane %v3093_v54, 7  ;;  %v4563_v22 = vld [vmem:[#allocation29_spill] sm:$0xff] }
 0x251   :  { %1637 = vst [vmem:[#allocation1 + $0x3] ss:$4 sm:$0xff] %v4555_v35  ;;  %v3644_v49 = vld.sshfl [vmem:[#allocation1 + $0x20] sm:$0xff pattern:$0x73625140]  ;;  %v1580_v35 = vrot.slane %v4484_v44, 7 }
 0x252   :  { %1605 = vst [vmem:[#allocation1 + $0x20] ss:$4 sm:$0xff] %v4556_v16  ;;  %v1582_v50 = vrot.slane %v4560_v30, 2 }
 0x253   :  { %1607 = vst [vmem:[#allocation1 + $0x21] ss:$4 sm:$0xff] %v1554_v45  ;;  %v1581_v16 = vsel %vm2951_vm9, %v1579_v10, %v1580_v35  ;;  %v1583_v45 = vrot.slane %v4487_v14, 7  ;;  %v4486_v10 = vrot.slane %v3351_v46, 2 }
 0x254   :  { %1609 = vst [vmem:[#allocation1 + $0x22] ss:$4 sm:$0xff] %v4558_v56  ;;  %v4561_v56 = vld [vmem:[#allocation28_spill] sm:$0xff] }
 0x255   :  { %1611 = vst [vmem:[#allocation1 + $0x23] ss:$4 sm:$0xff] %v4559_v3  ;;  %v4562_v3 = vrot.slane %v3074_v33, 7  ;;  %v1584_v30 = vsel %vm2951_vm9, %v1582_v50, %v1583_v45  ;;  %v4566_v50 = vrot.slane %v3351_v46, 7 }
 0x257   :  { %v1561_v44 = vrot.slane %v4562_v3, 2  ;;  %v1588_v45 = vrot.slane %v4566_v50, 2  ;;  %v1589_v3 = vrot.slane %v4486_v10, 7  ;;  %v4570_v50 = vrot.slane %v3163_v9, 7  ;;  %v1003_v10 = vpop.f32.mrf.mxu1 }
 0x258   :  { %v3663_v48 = vld.sshfl [vmem:[#allocation1] sm:$0xff pattern:$0x73625140]  ;;  %2704 = vmatmul.msk.f32.gmra.mxu3 %vm961_vm10, %v3595_v28 }
 0x259   :  { %1644 = vst [vmem:[#allocation1] ss:$4 sm:$0xff] %v1581_v16  ;;  %v1563_v16 = vsel %vm2951_vm9, %v1561_v44, %v1562_v2  ;;  %v1590_v28 = vsel %vm2951_vm9, %v1588_v45, %v1589_v3  ;;  %v4572_v45 = vld [vmem:[#allocation37_spill] sm:$0xff] }
 0x25a   :  { %1645 = vst [vmem:[#allocation1 + $0x1] ss:$4 sm:$0xff] %v4561_v56  ;;  %v4565_v56 = vld [vmem:[#allocation15_spill] sm:$0xff] }
 0x25b   :  { %1646 = vst [vmem:[#allocation1 + $0x2] ss:$4 sm:$0xff] %v4563_v22  ;;  %v4568_v22 = vrot.slane %v3138_v39, 7 }
 0x25c   :  { %1647 = vst [vmem:[#allocation1 + $0x3] ss:$4 sm:$0xff] %v1584_v30  ;;  %v1613_v35 = vld.sshfl [vmem:[#allocation1 + $0x20] sm:$0xff pattern:$0x73625140]  ;;  %v4567_v30 = vld [vmem:[#allocation16_spill] sm:$0xff] }
 0x25d   :  { %1618 = vst [vmem:[#allocation1 + $0x20] ss:$4 sm:$0xff] %v4564_v43  ;;  %2712 = vmatmul.msk.f32.gmra.mxu1 %vm961_vm10, %v1613_v35  ;;  %v4488_v43 = vrot.slane %v3135_v34, 4  ;;  %v1567_v35 = vrot.slane %v4568_v22, 2  ;;  %v4571_v22 = vld [vmem:[#allocation36_spill] sm:$0xff] }
 0x25e   :  { %1619 = vst [vmem:[#allocation1 + $0x21] ss:$4 sm:$0xff] %v4565_v56  ;;  %v1147_v14 = vpop.f32.mrf.mxu2 }
 0x25f   :  { %1620 = vst [vmem:[#allocation1 + $0x22] ss:$4 sm:$0xff] %v1563_v16  ;;  %v4569_v16 = vld [vmem:[#allocation34_spill] sm:$0xff]  ;;  %v1568_v56 = vrot.slane %v4488_v43, 7  ;;  %v4575_v43 = vld [vmem:[#allocation21_spill] sm:$0xff] }
 0x260   :  { %1621 = vst [vmem:[#allocation1 + $0x23] ss:$4 sm:$0xff] %v4567_v30  ;;  %v1570_v30 = vrot.slane %v4570_v50, 2  ;;  %2705 = vmatmul.msk.f32.gmra.mxu3 %vm961_vm10, %v3542_v63  ;;  %v4574_v50 = vld [vmem:[#allocation20_spill] sm:$0xff]  ;;  %v4576_v63 = vrot.slane %v3233_v11, 7 }
 0x261   :  { %v1569_v2 = vsel %vm2951_vm9, %v1567_v35, %v1568_v56  ;;  %v698_v35 = vrot.slane %v3233_v11, 2  ;;  %v2724_v56 = vld [vmem:[%s4412_s2 + $0x48] sm:$0xff] }
 0x262   :  { %1981 = vmatpush.msrb.mxu2 %v2724_v56  ;;  %v4586_v56 = vrot.slane %v4550_v51, 7 }
 0x263   :  { %v3690_v44 = vld.sshfl [vmem:[#allocation1] sm:$0xff pattern:$0x73625140] }
 0x264   :  { %1654 = vst [vmem:[#allocation1] ss:$4 sm:$0xff] %v4569_v16  ;;  %v3706_v16 = vadd.f32 %v1147_v14, %v1003_v10  ;;  %v1576_v10 = vrot.slane %v4576_v63, 2 }
 0x265   :  { %1655 = vst [vmem:[#allocation1 + $0x1] ss:$4 sm:$0xff] %v1590_v28  ;;  %2713 = vmatmul.msk.f32.gmra.mxu1 %vm961_vm10, %v3612_v21  ;;  %v4573_v21 = vrot.slane %v3155_v1, 6 }
 0x266   :  { %1656 = vst [vmem:[#allocation1 + $0x2] ss:$4 sm:$0xff] %v4571_v22 }
 0x267   :  { %1657 = vst [vmem:[#allocation1 + $0x3] ss:$4 sm:$0xff] %v4572_v45  ;;  %v1623_v3 = vld.sshfl [vmem:[#allocation1 + $0x20] sm:$0xff pattern:$0x73625140]  ;;  %v1571_v28 = vrot.slane %v4573_v21, 7 }
 0x268   :  { %1628 = vst [vmem:[#allocation1 + $0x20] ss:$4 sm:$0xff] %v1569_v2  ;;  %v1577_v2 = vrot.slane %v698_v35, 7  ;;  %2706 = vmatmul.msk.f32.gmra.mxu3 %vm961_vm10, %v3620_v31  ;;  %v4577_v45 = vld [vmem:[#allocation25_spill] sm:$0xff]  ;;  %v4578_v31 = vld [vmem:[#allocation26_spill] sm:$0xff]  ;;  %v1586_v21 = vrot.slane %v3329_v41, 7 }
 0x269   :  { %1629 = vst [vmem:[#allocation1 + $0x21] ss:$4 sm:$0xff] %v4574_v50  ;;  %v1572_v22 = vsel %vm2951_vm9, %v1570_v30, %v1571_v28 }
 0x26a   :  { %1630 = vst [vmem:[#allocation1 + $0x22] ss:$4 sm:$0xff] %v4575_v43  ;;  %v2723_v43 = vld [vmem:[%s4412_s2 + $0x40] sm:$0xff] }
 0x26b   :  { %1631 = vst [vmem:[#allocation1 + $0x23] ss:$4 sm:$0xff] %v1572_v22  ;;  %1982 = vmatpush.msrb.mxu2 %v2723_v43  ;;  %v4583_v22 = vld [vmem:[#allocation31_spill] sm:$0xff] }
 0x26d   :  { %2714 = vmatmul.msk.f32.gmra.mxu1 %vm961_vm10, %v1623_v3  ;;  %v4580_v3 = vrot.slane %v3016_v6, 4 }
 0x26e   :  { %v3718_v14 = vld.sshfl [vmem:[#allocation1] sm:$0xff pattern:$0x73625140] }
 0x26f   :  { %1876 = vst [vmem:[#allocation1] ss:$4 sm:$0xff] %v2945_v36  ;;  %v1578_v36 = vsel %vm2951_vm9, %v1576_v10, %v1577_v2  ;;  %v4584_v10 = vld [vmem:[#allocation32_spill] sm:$0xff] }
 0x270   :  { %1878 = vst [vmem:[#allocation1 + $0x1] ss:$4 sm:$0xff] %v2948_v37  ;;  %v4579_v37 = vld [vmem:[#allocation27_spill] sm:$0xff]  ;;  %2707 = vmatmul.msk.f32.gmra.mxu3 %vm961_vm10, %v3564_v20  ;;  %v4582_v20 = vrot.slane %v3037_v15, 6  ;;  %v1591_v15 = vrot.slane %v4586_v56, 2 }
 0x271   :  { %1880 = vst [vmem:[#allocation1 + $0x2] ss:$4 sm:$0xff] %v4536_v27  ;;  %v1030_v27 = vpop.f32.mrf.mxu3 }
 0x272   :  { %1882 = vst [vmem:[#allocation1 + $0x3] ss:$4 sm:$0xff] %v2981_v52  ;;  %v1633_v30 = vld.sshfl [vmem:[#allocation1 + $0x20] sm:$0xff pattern:$0x73625140] }
 0x273   :  { %1638 = vst [vmem:[#allocation1 + $0x20] ss:$4 sm:$0xff] %v4577_v45  ;;  %v4588_v45 = vrot.slane %v3411_v24, 7 }
 0x274   :  { %1639 = vst [vmem:[#allocation1 + $0x21] ss:$4 sm:$0xff] %v1578_v36 }
 0x275   :  { %1640 = vst [vmem:[#allocation1 + $0x22] ss:$4 sm:$0xff] %v4578_v31  ;;  %2715 = vmatmul.msk.f32.gmra.mxu1 %vm961_vm10, %v3632_v59  ;;  %v4581_v59 = vrot.slane %v4545_v26, 7  ;;  %v1594_v31 = vrot.slane %v4588_v45, 2 }
 0x276   :  { %1641 = vst [vmem:[#allocation1 + $0x23] ss:$4 sm:$0xff] %v4579_v37 }
 0x277   :  { %v1585_v28 = vrot.slane %v4581_v59, 2 }
 0x278   :  { %2708 = vmatmul.msk.f32.gmra.mxu3 %vm961_vm10, %v3644_v49  ;;  %v4587_v49 = vrot.slane %v3115_v7, 2 }
 0x279   :  { %v1891_v52 = vld.sshfl [vmem:[#allocation1] sm:$0xff pattern:$0x73625140]  ;;  %v1587_v63 = vsel %vm2951_vm9, %v1585_v28, %v1586_v21  ;;  %v1033_v2 = vpop.f32.mrf.mxu3 }
 0x27a   :  { %2725 = vmatmul.msk.f32.vlgmr.msrb.gmra.mxu2 %vm961_vm10, %v1891_v52  ;;  %1893 = vst [vmem:[#allocation1] ss:$4 sm:$0xff] %v4580_v3 }
 0x27b   :  { %1894 = vst [vmem:[#allocation1 + $0x1] ss:$4 sm:$0xff] %v3042_v17  ;;  %v4585_v17 = vld [vmem:[#allocation33_spill] sm:$0xff] }
 0x27c   :  { %1895 = vst [vmem:[#allocation1 + $0x2] ss:$4 sm:$0xff] %v3045_v18  ;;  %v717_v18 = vrot.slane %v3371_v29, 4 }
 0x27d   :  { %v1643_v50 = vld.sshfl [vmem:[#allocation1 + $0x20] sm:$0xff pattern:$0x73625140]  ;;  %2716 = vmatmul.msk.f32.gmra.mxu1 %vm961_vm10, %v1633_v30  ;;  %1896 = vst [vmem:[#allocation1 + $0x3] ss:$4 sm:$0xff] %v4582_v20  ;;  %v721_v30 = vrot.slane %v3404_v58, 6 }
 0x27e   :  { %1648 = vst [vmem:[#allocation1 + $0x20] ss:$4 sm:$0xff] %v4583_v22  ;;  %v1592_v36 = vrot.slane %v717_v18, 7 }
 0x27f   :  { %1649 = vst [vmem:[#allocation1 + $0x21] ss:$4 sm:$0xff] %v4584_v10 }
 0x280   :  { %1650 = vst [vmem:[#allocation1 + $0x22] ss:$4 sm:$0xff] %v1587_v63  ;;  %v1593_v52 = vsel %vm2951_vm9, %v1591_v15, %v1592_v36  ;;  %v1196_v15 = vrot.slane %v3706_v16, 4 }
 0x281   :  { %1651 = vst [vmem:[#allocation1 + $0x23] ss:$4 sm:$0xff] %v4585_v17  ;;  %v1036_v37 = vpop.f32.mrf.mxu3 }
 0x284   :  { %v1901_v43 = vld.sshfl [vmem:[#allocation1] sm:$0xff pattern:$0x73625140] }
 0x285   :  { %2717 = vmatmul.msk.f32.gmra.mxu1 %vm961_vm10, %v3663_v48  ;;  %1903 = vst [vmem:[#allocation1] ss:$4 sm:$0xff] %v3115_v7  ;;  %v1595_v48 = vrot.slane %v721_v30, 7 }
 0x286   :  { %1904 = vst [vmem:[#allocation1 + $0x1] ss:$4 sm:$0xff] %v4587_v49  ;;  %v3903_v49 = vld [vmem:[%s4413_s3] ss:$0 sm:$0xff] }
 0x287   :  { %1905 = vst [vmem:[#allocation1 + $0x2] ss:$4 sm:$0xff] %v3135_v34  ;;  %v1596_v7 = vsel %vm2951_vm9, %v1594_v31, %v1595_v48 }
 0x288   :  { %v1653_v3 = vld.sshfl [vmem:[#allocation1 + $0x20] sm:$0xff pattern:$0x73625140]  ;;  %1906 = vst [vmem:[#allocation1 + $0x3] ss:$4 sm:$0xff] %v3138_v39 }
 0x289   :  { %1658 = vst [vmem:[#allocation1 + $0x20] ss:$4 sm:$0xff] %v1593_v52  ;;  %v1174_v21 = vpop.f32.mrf.mxu3 }
 0x28a   :  { %1659 = vst [vmem:[#allocation1 + $0x21] ss:$4 sm:$0xff] %v3425_v47  ;;  %v3787_v28 = vadd.f32 %v1174_v21, %v1030_v27 }
 0x28b   :  { %1660 = vst [vmem:[#allocation1 + $0x22] ss:$4 sm:$0xff] %v3433_v61 }
 0x28c   :  { %1661 = vst [vmem:[#allocation1 + $0x23] ss:$4 sm:$0xff] %v1596_v7 }
 0x28d   :  { %2718 = vmatmul.msk.f32.gmra.mxu1 %vm961_vm10, %v1643_v50 }
 0x28f   :  { %v1911_v59 = vld.sshfl [vmem:[#allocation1] sm:$0xff pattern:$0x73625140] }
 0x290   :  { %1913 = vst [vmem:[#allocation1] ss:$4 sm:$0xff] %v3189_v23 }
 0x291   :  { %1914 = vst [vmem:[#allocation1 + $0x1] ss:$4 sm:$0xff] %v3192_v25  ;;  %v1177_v47 = vpop.f32.mrf.mxu3 }
 0x292   :  { %1915 = vst [vmem:[#allocation1 + $0x2] ss:$4 sm:$0xff] %v3211_v55  ;;  %v3800_v23 = vadd.f32 %v1177_v47, %v1033_v2  ;;  %v4590_v55 = vrot.slane %v3253_v40, 4 }
 0x293   :  { %v1663_v39 = vld.sshfl [vmem:[#allocation1 + $0x20] sm:$0xff pattern:$0x73625140]  ;;  %1916 = vst [vmem:[#allocation1 + $0x3] ss:$4 sm:$0xff] %v3220_v0  ;;  %v4591_v0 = vrot.slane %v3273_v42, 6 }
 0x294   :  { %1884 = vst [vmem:[#allocation1 + $0x20] ss:$4 sm:$0xff] %v2995_v60  ;;  %v4592_v42 = vrot.slane %v3351_v46, 2 }
 0x295   :  { %1886 = vst [vmem:[#allocation1 + $0x21] ss:$4 sm:$0xff] %v4589_v38  ;;  %2719 = vmatmul.msk.f32.gmra.mxu1 %vm961_vm10, %v3690_v44  ;;  %v3910_v38 = vrot.slane %v3903_v49, 4 }
 0x296   :  { %1888 = vst [vmem:[#allocation1 + $0x22] ss:$4 sm:$0xff] %v3016_v6 }
 0x297   :  { %1890 = vst [vmem:[#allocation1 + $0x23] ss:$4 sm:$0xff] %v3019_v8 }
 0x299   :  { %v1180_v6 = vpop.f32.mrf.mxu3 }
 0x29a   :  { %v1921_v25 = vld.sshfl [vmem:[#allocation1] sm:$0xff pattern:$0x73625140]  ;;  %v3812_v8 = vadd.f32 %v1180_v6, %v1036_v37 }
 0x29b   :  { %1923 = vst [vmem:[#allocation1] ss:$4 sm:$0xff] %v4590_v55 }
 0x29c   :  { %1924 = vst [vmem:[#allocation1 + $0x1] ss:$4 sm:$0xff] %v3278_v19 }
 0x29d   :  { %2720 = vmatmul.msk.f32.gmra.mxu1 %vm961_vm10, %v1653_v3  ;;  %1925 = vst [vmem:[#allocation1 + $0x2] ss:$4 sm:$0xff] %v3281_v12 }
 0x29e   :  { %v1892_v60 = vld.sshfl [vmem:[#allocation1 + $0x20] sm:$0xff pattern:$0x73625140]  ;;  %1926 = vst [vmem:[#allocation1 + $0x3] ss:$4 sm:$0xff] %v4591_v0 }
 0x29f   :  { %2726 = vmatmul.msk.f32.gmra.mxu2 %vm961_vm10, %v1892_v60  ;;  %1897 = vst [vmem:[#allocation1 + $0x20] ss:$4 sm:$0xff] %v3071_v32 }
 0x2a0   :  { %1898 = vst [vmem:[#allocation1 + $0x21] ss:$4 sm:$0xff] %v3074_v33  ;;  %v4593_v33 = vrot.slane %v3135_v34, 4 }
 0x2a1   :  { %1899 = vst [vmem:[#allocation1 + $0x22] ss:$4 sm:$0xff] %v3093_v54  ;;  %v4594_v54 = vrot.slane %v3155_v1, 6 }
 0x2a2   :  { %1900 = vst [vmem:[#allocation1 + $0x23] ss:$4 sm:$0xff] %v3102_v57  ;;  %v3831_v57 = vpop.f32.mrf.mxu1 }
 0x2a5   :  { %2721 = vmatmul.msk.f32.gmra.mxu1 %vm961_vm10, %v3718_v14  ;;  %v1931_v19 = vld.sshfl [vmem:[#allocation1] sm:$0xff pattern:$0x73625140] }
 0x2a6   :  { %1933 = vst [vmem:[#allocation1] ss:$4 sm:$0xff] %v3351_v46  ;;  %v3833_v46 = vpop.f32.mrf.mxu2 }
 0x2a7   :  { %2727 = vmatmul.msk.f32.gmra.mxu2 %vm961_vm10, %v1901_v43  ;;  %1934 = vst [vmem:[#allocation1 + $0x1] ss:$4 sm:$0xff] %v4592_v42  ;;  %v1197_v43 = vrot.slane %v3706_v16, 6 }
 0x2a8   :  { %1935 = vst [vmem:[#allocation1 + $0x2] ss:$4 sm:$0xff] %v3371_v29 }
 0x2a9   :  { %v1902_v32 = vld.sshfl [vmem:[#allocation1 + $0x20] sm:$0xff pattern:$0x73625140]  ;;  %1936 = vst [vmem:[#allocation1 + $0x3] ss:$4 sm:$0xff] %v4550_v51 }
 0x2aa   :  { %1907 = vst [vmem:[#allocation1 + $0x20] ss:$4 sm:$0xff] %v4593_v33  ;;  %v3837_v34 = vpop.f32.mrf.mxu1 }
 0x2ab   :  { %1908 = vst [vmem:[#allocation1 + $0x21] ss:$4 sm:$0xff] %v3160_v4 }
 0x2ac   :  { %1909 = vst [vmem:[#allocation1 + $0x22] ss:$4 sm:$0xff] %v3163_v9 }
 0x2ad   :  { %1910 = vst [vmem:[#allocation1 + $0x23] ss:$4 sm:$0xff] %v4594_v54  ;;  %2722 = vmatmul.msk.f32.gmra.mxu1 %vm961_vm10, %v1663_v39  ;;  %v3907_v39 = vrot.slane %v3903_v49, 2 }
 0x2ae   :  { %v3844_v1 = vpop.f32.mrf.mxu2 }
 0x2af   :  { %2728 = vmatmul.msk.f32.gmra.mxu2 %vm961_vm10, %v1902_v32 }
 0x2b0   :  { %v1941_v58 = vld.sshfl [vmem:[#allocation1] sm:$0xff pattern:$0x73625140] }
 0x2b2   :  { %v3846_v4 = vpop.f32.mrf.mxu1 }
 0x2b4   :  { %v1912_v12 = vld.sshfl [vmem:[#allocation1 + $0x20] sm:$0xff pattern:$0x73625140] }
 0x2b5   :  { %1917 = vst [vmem:[#allocation1 + $0x20] ss:$4 sm:$0xff] %v3233_v11 }
 0x2b6   :  { %1918 = vst [vmem:[#allocation1 + $0x21] ss:$4 sm:$0xff] %v698_v35  ;;  %v3852_v11 = vpop.f32.mrf.mxu2 }
 0x2b7   :  { %2729 = vmatmul.msk.f32.gmra.mxu2 %vm961_vm10, %v1911_v59  ;;  %1919 = vst [vmem:[#allocation1 + $0x22] ss:$4 sm:$0xff] %v3253_v40 }
 0x2b8   :  { %1920 = vst [vmem:[#allocation1 + $0x23] ss:$4 sm:$0xff] %v3256_v13 }
 0x2ba   :  { %v3855_v40 = vpop.f32.mrf.mxu1 }
 0x2be   :  { %v3861_v61 = vpop.f32.mrf.mxu2 }
 0x2bf   :  { %2730 = vmatmul.msk.f32.gmra.mxu2 %vm961_vm10, %v1912_v12  ;;  %v1922_v9 = vld.sshfl [vmem:[#allocation1 + $0x20] sm:$0xff pattern:$0x73625140] }
 0x2c0   :  { %1927 = vst [vmem:[#allocation1 + $0x20] ss:$4 sm:$0xff] %v3307_v53  ;;  %v1378_v53 = vpop.f32.mrf.mxu3 }
 0x2c1   :  { %1928 = vst [vmem:[#allocation1 + $0x21] ss:$4 sm:$0xff] %v4545_v26  ;;  %v1426_v63 = vrot.slane %v1378_v53, 2  ;;  %v1427_v10 = vrot.slane %v1378_v53, 4  ;;  %v1428_v2 = vrot.slane %v1378_v53, 6  ;;  %v1498_v45 = vadd.f32 %v1378_v53, %v3706_v16 }
 0x2c2   :  { %1929 = vst [vmem:[#allocation1 + $0x22] ss:$4 sm:$0xff] %v3329_v41  ;;  %v3864_v41 = vpop.f32.mrf.mxu1 }
 0x2c3   :  { %1930 = vst [vmem:[#allocation1 + $0x23] ss:$4 sm:$0xff] %v3338_v5  ;;  %v1500_v37 = vadd.f32 %v1427_v10, %v1196_v15  ;;  %v1501_v52 = vadd.f32 %v1428_v2, %v1197_v43  ;;  %v3934_v10 = vadd.f32 %v3861_v61, %v3855_v40 }
 0x2c6   :  { %v3871_v26 = vpop.f32.mrf.mxu2 }
 0x2c7   :  { %2731 = vmatmul.msk.f32.gmra.mxu2 %vm961_vm10, %v1921_v25 }
 0x2c8   :  { %v3873_v29 = vpop.f32.mrf.mxu3 }
 0x2ca   :  { %v1932_v13 = vld.sshfl [vmem:[#allocation1 + $0x20] sm:$0xff pattern:$0x73625140]  ;;  %v3869_v5 = vpop.f32.mrf.mxu1 }
 0x2cb   :  { %1937 = vst [vmem:[#allocation1 + $0x20] ss:$4 sm:$0xff] %v717_v18  ;;  %v1195_v18 = vrot.slane %v3706_v16, 2 }
 0x2cc   :  { %1938 = vst [vmem:[#allocation1 + $0x21] ss:$4 sm:$0xff] %v3408_v62 }
 0x2cd   :  { %1939 = vst [vmem:[#allocation1 + $0x22] ss:$4 sm:$0xff] %v3411_v24  ;;  %v1499_v31 = vadd.f32 %v1426_v63, %v1195_v18  ;;  %v3930_v63 = vadd.f32 %v3852_v11, %v3846_v4  ;;  %v2513_v4 = vld [vmem:[%s4414_s4 + $0x58] sm:$0xff] }
 0x2ce   :  { %1940 = vst [vmem:[#allocation1 + $0x23] ss:$4 sm:$0xff] %v721_v30  ;;  %v3879_v24 = vpop.f32.mrf.mxu2  ;;  %2561 = vmatpush.msrb.mxu3 %v2513_v4 }
 0x2cf   :  { %2732 = vmatmul.msk.f32.gmra.mxu2 %vm961_vm10, %v1922_v9  ;;  %v1205_v15 = vrot.slane %v3930_v63, 4  ;;  %v3959_v43 = vadd.f32 %v3879_v24, %v3869_v5 }
 0x2d0   :  { %v3881_v51 = vpop.f32.mrf.mxu3 }
 0x2d1   :  { %v1434_v4 = vrot.slane %v3881_v51, 6 }
 0x2d2   :  { %v3876_v62 = vpop.f32.mrf.mxu1 }
 0x2d5   :  { %v1942_v27 = vld.sshfl [vmem:[#allocation1 + $0x20] sm:$0xff pattern:$0x73625140] }
 0x2d6   :  { %v3886_v35 = vpop.f32.mrf.mxu2 }
 0x2d7   :  { %2733 = vmatmul.msk.f32.gmra.mxu2 %vm961_vm10, %v1931_v19 }
 0x2d8   :  { %v3888_v14 = vpop.f32.mrf.mxu3 }
 0x2da   :  { %v3883_v44 = vpop.f32.mrf.mxu1 }
 0x2de   :  { %v3891_v20 = vpop.f32.mrf.mxu2 }
 0x2df   :  { %2734 = vmatmul.msk.f32.gmra.mxu2 %vm961_vm10, %v1932_v13 }
 0x2e0   :  { %v3893_v22 = vpop.f32.mrf.mxu3 }
 0x2e2   :  { %v1705_v50 = vpop.f32.mrf.mxu1 }
 0x2e3   :  { %v1753_v56 = vrot.slane %v1705_v50, 2  ;;  %v1754_v30 = vrot.slane %v1705_v50, 4  ;;  %v1755_v36 = vrot.slane %v1705_v50, 6  ;;  %v1825_v3 = vadd.f32 %v1705_v50, %v1498_v45 }
 0x2e4   :  { %v3926_v50 = vadd.f32 %v3844_v1, %v3837_v34  ;;  %v3943_v34 = vadd.f32 %v3871_v26, %v3864_v41  ;;  %v1206_v41 = vrot.slane %v3930_v63, 6  ;;  %v1207_v26 = vrot.slane %v3934_v10, 2 }
 0x2e5   :  { %v1826_v48 = vadd.f32 %v1753_v56, %v1499_v31  ;;  %v1827_v7 = vadd.f32 %v1754_v30, %v1500_v37  ;;  %v1828_v21 = vadd.f32 %v1755_v36, %v1501_v52  ;;  %v1204_v56 = vrot.slane %v3930_v63, 2 }
 0x2e6   :  { %v1201_v11 = vrot.slane %v3926_v50, 2  ;;  %v1202_v40 = vrot.slane %v3926_v50, 4  ;;  %v1203_v61 = vrot.slane %v3926_v50, 6  ;;  %v1208_v30 = vrot.slane %v3934_v10, 4 }
 0x2e7   :  { %2735 = vmatmul.msk.f32.gmra.mxu2 %vm961_vm10, %v1941_v58  ;;  %v1209_v36 = vrot.slane %v3934_v10, 6  ;;  %v1210_v37 = vrot.slane %v3943_v34, 2  ;;  %v1211_v52 = vrot.slane %v3943_v34, 4  ;;  %v1212_v5 = vrot.slane %v3943_v34, 6 }
 0x2e8   :  { %v3912_v0 = vpop.f32.mrf.mxu3  ;;  %v1506_v31 = vadd.f32 %v3881_v51, %v3926_v50  ;;  %v1438_v45 = vrot.slane %v3893_v22, 2 }
 0x2ea   :  { %v3895_v17 = vpop.f32.mrf.mxu1 }
 0x2ef   :  { %2736 = vmatmul.msk.f32.gmra.mxu2 %vm961_vm10, %v1942_v27  ;;  %v3922_v27 = vadd.f32 %v3833_v46, %v3831_v57 }
 0x2f0   :  { %v3936_v2 = vpop.f32.mrf.mxu3 }
 0x2f1   :  { %v1198_v18 = vrot.slane %v3922_v27, 2  ;;  %v1199_v57 = vrot.slane %v3922_v27, 4  ;;  %v1200_v46 = vrot.slane %v3922_v27, 6 }
 0x2f2   :  { %v3915_v32 = vpop.f32.mrf.mxu1 }
 0x2fa   :  { %v3945_v1 = vpop.f32.mrf.mxu1 }
 0x2fd   :  { %v1984_v59 = vpop.f32.mrf.mxu2 }
 0x2fe   :  { %v2032_v47 = vrot.slane %v1984_v59, 2  ;;  %v2033_v25 = vrot.slane %v1984_v59, 4  ;;  %v2034_v55 = vrot.slane %v1984_v59, 6  ;;  %v2104_v60 = vadd.f32 %v1984_v59, %v1825_v3 }
 0x2ff   :  { %v1213_v59 = vrot.slane %v3959_v43, 2 }
 0x300   :  { %v2105_v16 = vadd.f32 %v2032_v47, %v1826_v48  ;;  %v2106_v6 = vadd.f32 %v2033_v25, %v1827_v7  ;;  %v2107_v19 = vadd.f32 %v2034_v55, %v1828_v21  ;;  %v2160_v42 = vadd.f32 %v3903_v49, %v2104_v60 }
 0x301   :  { %v3970_v48 = vadd.f32 %v3886_v35, %v3876_v62  ;;  %v3977_v21 = vadd.f32 %v3891_v20, %v3883_v44  ;;  %v1214_v47 = vrot.slane %v3959_v43, 4  ;;  %v1215_v25 = vrot.slane %v3959_v43, 6  ;;  %v2512_v62 = vld [vmem:[%s4414_s4 + $0x50] sm:$0xff] }
 0x302   :  { %v2161_v33 = vadd.f32 %v3907_v39, %v2105_v16  ;;  %v2162_v54 = vadd.f32 %v3910_v38, %v2106_v6  ;;  %v2163_v12 = vadd.f32 %v3903_v49, %v2107_v19  ;;  %v2208_v9 = vmax.f32 %v2160_v42, 0.0  ;;  %2562 = vmatpush.msrb.mxu3 %v2512_v62  ;;  %v4004_v16 = vpop.f32.mrf.mxu1 }
 0x303   :  { %v1429_v44 = vrot.slane %v3873_v29, 2  ;;  %v1216_v20 = vrot.slane %v3970_v48, 2  ;;  %v1430_v19 = vrot.slane %v3873_v29, 4  ;;  %v1431_v42 = vrot.slane %v3873_v29, 6 }
 0x304   :  { %v2209_v13 = vmax.f32 %v2161_v33, 0.0  ;;  %v2210_v53 = vmax.f32 %v2162_v54, 0.0  ;;  %v2211_v58 = vmax.f32 %v2163_v12, 0.0  ;;  %2304 = vst [vmem:[#allocation1] ss:$4 sm:$0xff] %v2208_v9  ;;  %v3994_v33 = vpop.f32.mrf.mxu3  ;;  %v1432_v9 = vrot.slane %v3881_v51, 2 }
 0x305   :  { %v1435_v62 = vrot.slane %v3888_v14, 2  ;;  %v1502_v60 = vadd.f32 %v3873_v29, %v3922_v27  ;;  %v1503_v35 = vadd.f32 %v1429_v44, %v1198_v18  ;;  %v1436_v55 = vrot.slane %v3888_v14, 4 }
 0x306   :  { %2306 = vst [vmem:[#allocation1 + $0x1] ss:$4 sm:$0xff] %v2209_v13  ;;  %v1433_v13 = vrot.slane %v3881_v51, 4  ;;  %v1437_v7 = vrot.slane %v3888_v14, 6  ;;  %v1504_v24 = vadd.f32 %v1430_v19, %v1199_v57  ;;  %v1505_v3 = vadd.f32 %v1431_v42, %v1200_v46  ;;  %v2511_v51 = vld [vmem:[%s4414_s4 + $0x48] sm:$0xff] }
 0x307   :  { %2308 = vst [vmem:[#allocation1 + $0x2] ss:$4 sm:$0xff] %v2210_v53  ;;  %v1439_v12 = vrot.slane %v3893_v22, 4  ;;  %v1440_v54 = vrot.slane %v3893_v22, 6  ;;  %v1509_v6 = vadd.f32 %v1434_v4, %v1203_v61  ;;  %v4017_v29 = vadd.f32 %v3888_v14, %v3930_v63  ;;  %2563 = vmatpush.msrb.mxu3 %v2511_v51 }
 0x308   :  { %2311 = vst [vmem:[#allocation1 + $0x20] ss:$4 sm:$0xff] %v2211_v58  ;;  %v1507_v58 = vadd.f32 %v1432_v9, %v1201_v11  ;;  %v1508_v53 = vadd.f32 %v1433_v13, %v1202_v40  ;;  %v4019_v27 = vadd.f32 %v1435_v62, %v1204_v56  ;;  %v1441_v18 = vrot.slane %v3912_v0, 2 }
 0x309   :  { %v4025_v50 = vadd.f32 %v1436_v55, %v1205_v15  ;;  %v4027_v57 = vadd.f32 %v1437_v7, %v1206_v41  ;;  %v1442_v46 = vrot.slane %v3912_v0, 4  ;;  %v1443_v11 = vrot.slane %v3912_v0, 6 }
 0x30a   :  { %v4033_v14 = vadd.f32 %v3893_v22, %v3934_v10  ;;  %v4035_v63 = vadd.f32 %v1438_v45, %v1207_v26  ;;  %v1756_v40 = vrot.slane %v3895_v17, 2  ;;  %v1757_v61 = vrot.slane %v3895_v17, 4 }
 0x30b   :  { %v4039_v56 = vadd.f32 %v1439_v12, %v1208_v30  ;;  %v4041_v15 = vadd.f32 %v1440_v54, %v1209_v36  ;;  %v1758_v41 = vrot.slane %v3895_v17, 6  ;;  %v4046_v7 = vadd.f32 %v3912_v0, %v3943_v34  ;;  %v4070_v12 = vpop.f32.mrf.mxu1 }
 0x30c   :  { %v4048_v55 = vadd.f32 %v1441_v18, %v1210_v37  ;;  %v1444_v22 = vrot.slane %v3936_v2, 2  ;;  %v1445_v10 = vrot.slane %v3936_v2, 4  ;;  %v1446_v26 = vrot.slane %v3936_v2, 6  ;;  %v4053_v45 = vpop.f32.mrf.mxu3 }
 0x30d   :  { %v4057_v30 = vadd.f32 %v1442_v46, %v1211_v52  ;;  %v4061_v36 = vadd.f32 %v1443_v11, %v1212_v5  ;;  %v1759_v0 = vrot.slane %v3915_v32, 2  ;;  %v1760_v37 = vrot.slane %v3915_v32, 4 }
 0x30e   :  { %v1829_v44 = vadd.f32 %v3895_v17, %v1502_v60  ;;  %v1830_v19 = vadd.f32 %v1756_v40, %v1503_v35  ;;  %v1831_v42 = vadd.f32 %v1757_v61, %v1504_v24  ;;  %v4068_v54 = vadd.f32 %v3936_v2, %v3959_v43 }
 0x30f   :  { %v1832_v52 = vadd.f32 %v1758_v41, %v1505_v3  ;;  %v1761_v9 = vrot.slane %v3915_v32, 6  ;;  %v1447_v34 = vrot.slane %v3994_v33, 2  ;;  %v1448_v5 = vrot.slane %v3994_v33, 4  ;;  %v2510_v3 = vld [vmem:[%s4414_s4 + $0x40] sm:$0xff] }
 0x310   :  { %v1833_v13 = vadd.f32 %v3915_v32, %v1506_v31  ;;  %v4078_v17 = vadd.f32 %v1444_v22, %v1213_v59  ;;  %v4082_v24 = vadd.f32 %v1445_v10, %v1214_v47  ;;  %v4086_v2 = vadd.f32 %v1446_v26, %v1215_v25  ;;  %2564 = vmatpush.msrb.mxu3 %v2510_v3 }
 0x311   :  { %v1834_v35 = vadd.f32 %v1759_v0, %v1507_v58  ;;  %v1835_v60 = vadd.f32 %v1760_v37, %v1508_v53  ;;  %v1449_v32 = vrot.slane %v3994_v33, 6  ;;  %v4094_v31 = vadd.f32 %v3994_v33, %v3970_v48 }
 0x312   :  { %v1836_v25 = vadd.f32 %v1761_v9, %v1509_v6  ;;  %v1762_v18 = vrot.slane %v3945_v1, 2  ;;  %v4099_v51 = vadd.f32 %v1447_v34, %v1216_v20  ;;  %v4595_v53 = vrot.slane %v3970_v48, 4 }
 0x313   :  { %v1763_v61 = vrot.slane %v3945_v1, 4  ;;  %v1764_v41 = vrot.slane %v3945_v1, 6  ;;  %v1450_v6 = vrot.slane %v4053_v45, 2  ;;  %v1451_v22 = vrot.slane %v4053_v45, 4 }
 0x314   :  { %v4103_v58 = vadd.f32 %v1448_v5, %v4595_v53  ;;  %v1405_v10 = vpop.f32.mrf.mxu3  ;;  %v4124_v9 = vadd.f32 %v4053_v45, %v3977_v21  ;;  %v4127_v34 = vadd.f32 %v1762_v18, %v4019_v27  ;;  %v4129_v5 = vpop.f32.mrf.mxu1  ;;  %v4598_v27 = vrot.slane %v3977_v21, 4 }
 0x322   :  { %v1987_v59 = vpop.f32.mrf.mxu2 }
 0x323   :  { %v2035_v47 = vrot.slane %v1987_v59, 2  ;;  %v2036_v4 = vrot.slane %v1987_v59, 4  ;;  %v2037_v62 = vrot.slane %v1987_v59, 6  ;;  %v2108_v43 = vadd.f32 %v1987_v59, %v1829_v44 }
 0x324   :  { %v4115_v44 = vadd.f32 %v3945_v1, %v4017_v29  ;;  %v2509_v1 = vld [vmem:[%s4414_s4 + $0x38] sm:$0xff]  ;;  %v1840_v29 = vadd.f32 %v1764_v41, %v4027_v57  ;;  %v1766_v57 = vrot.slane %v4004_v16, 4 }
 0x325   :  { %v2109_v46 = vadd.f32 %v2035_v47, %v1830_v19  ;;  %v2110_v33 = vadd.f32 %v2036_v4, %v1831_v42  ;;  %v2111_v11 = vadd.f32 %v2037_v62, %v1832_v52  ;;  %v2164_v40 = vadd.f32 %v3907_v39, %v2108_v43  ;;  %2565 = vmatpush.msrb.mxu3 %v2509_v1  ;;  %v2309_v43 = vld.sshfl [vmem:[#allocation1] sm:$0xff pattern:$0x73625140] }
 0x326   :  { %v4596_v19 = vrot.slane %v3970_v48, 6  ;;  %v1452_v52 = vrot.slane %v4053_v45, 6  ;;  %v1839_v48 = vadd.f32 %v1763_v61, %v4025_v50  ;;  %v4597_v45 = vrot.slane %v3977_v21, 2 }
 0x327   :  { %v2165_v20 = vadd.f32 %v3910_v38, %v2109_v46  ;;  %v2166_v26 = vadd.f32 %v3903_v49, %v2110_v33  ;;  %v2167_v0 = vadd.f32 %v3907_v39, %v2111_v11  ;;  %v2212_v37 = vmax.f32 %v2164_v40, 0.0 }
 0x328   :  { %v4119_v42 = vadd.f32 %v1449_v32, %v4596_v19  ;;  %v4138_v32 = vadd.f32 %v1450_v6, %v4597_v45  ;;  %v4142_v4 = vadd.f32 %v1451_v22, %v4598_v27  ;;  %v1765_v50 = vrot.slane %v4004_v16, 2 }
 0x329   :  { %v2213_v3 = vmax.f32 %v2165_v20, 0.0  ;;  %v2214_v59 = vmax.f32 %v2166_v26, 0.0  ;;  %v2215_v47 = vmax.f32 %v2167_v0, 0.0  ;;  %2313 = vst [vmem:[#allocation1 + $0x21] ss:$4 sm:$0xff] %v2212_v37  ;;  %v1767_v11 = vrot.slane %v4004_v16, 6 }
 0x32a   :  { %v1990_v62 = vpop.f32.mrf.mxu2  ;;  %v1453_v40 = vrot.slane %v1405_v10, 2  ;;  %v4150_v20 = vadd.f32 %v4004_v16, %v4033_v14  ;;  %v1454_v0 = vrot.slane %v1405_v10, 4  ;;  %v1455_v37 = vrot.slane %v1405_v10, 6 }
 0x32b   :  { %2315 = vst [vmem:[#allocation1 + $0x22] ss:$4 sm:$0xff] %v2213_v3  ;;  %v2038_v18 = vrot.slane %v1990_v62, 2  ;;  %v2039_v53 = vrot.slane %v1990_v62, 4  ;;  %v2040_v46 = vrot.slane %v1990_v62, 6  ;;  %v2112_v33 = vadd.f32 %v1990_v62, %v1833_v13 }
 0x32c   :  { %2317 = vst [vmem:[#allocation1] ss:$4 sm:$0xff] %v2214_v59  ;;  %v4599_v13 = vrot.slane %v3977_v21, 6  ;;  %v4163_v59 = vadd.f32 %v1766_v57, %v4039_v56  ;;  %v4166_v16 = vadd.f32 %v1767_v11, %v4041_v15  ;;  %v4169_v21 = vadd.f32 %v1405_v10, %v3787_v28 }
 0x32d   :  { %v2113_v61 = vadd.f32 %v2038_v18, %v1834_v35  ;;  %v2114_v41 = vadd.f32 %v2039_v53, %v1835_v60  ;;  %v2115_v6 = vadd.f32 %v2040_v46, %v1836_v25  ;;  %v2168_v22 = vadd.f32 %v3910_v38, %v2112_v33  ;;  %2318 = vst [vmem:[#allocation1 + $0x1] ss:$4 sm:$0xff] %v2215_v47  ;;  %v4175_v47 = vpop.f32.mrf.mxu3  ;;  %v4189_v33 = vpop.f32.mrf.mxu1 }
 0x32e   :  { %v4154_v26 = vadd.f32 %v1452_v52, %v4599_v13  ;;  %v4160_v25 = vadd.f32 %v1765_v50, %v4035_v63  ;;  %v4600_v14 = vrot.slane %v3787_v28, 2  ;;  %v2508_v63 = vld [vmem:[%s4414_s4 + $0x30] sm:$0xff]  ;;  %v1768_v56 = vrot.slane %v4070_v12, 2 }
 0x32f   :  { %v2169_v19 = vadd.f32 %v3903_v49, %v2113_v61  ;;  %v2170_v3 = vadd.f32 %v3907_v39, %v2114_v41  ;;  %v2171_v35 = vadd.f32 %v3910_v38, %v2115_v6  ;;  %v2216_v60 = vmax.f32 %v2168_v22, 0.0  ;;  %2566 = vmatpush.msrb.mxu3 %v2508_v63 }
 0x330   :  { %v4173_v52 = vadd.f32 %v1453_v40, %v4600_v14  ;;  %v4601_v15 = vrot.slane %v3787_v28, 4  ;;  %v4602_v62 = vrot.slane %v3787_v28, 6  ;;  %v1769_v61 = vrot.slane %v4070_v12, 4 }
 0x331   :  { %v2217_v1 = vmax.f32 %v2169_v19, 0.0  ;;  %v2218_v45 = vmax.f32 %v2170_v3, 0.0  ;;  %v2219_v27 = vmax.f32 %v2171_v35, 0.0  ;;  %2319 = vst [vmem:[#allocation1 + $0x2] ss:$4 sm:$0xff] %v2216_v60  ;;  %v1770_v41 = vrot.slane %v4070_v12, 6 }
 0x332   :  { %v4183_v10 = vadd.f32 %v1454_v0, %v4601_v15  ;;  %v4187_v18 = vadd.f32 %v1455_v37, %v4602_v62  ;;  %v1993_v53 = vpop.f32.mrf.mxu2  ;;  %v2316_v46 = vld.sshfl [vmem:[#allocation1 + $0x20] sm:$0xff pattern:$0x73625140]  ;;  %v4196_v28 = vadd.f32 %v4070_v12, %v4046_v7  ;;  %v1456_v6 = vrot.slane %v4175_v47, 2 }
 0x333   :  { %v2041_v50 = vrot.slane %v1993_v53, 2  ;;  %v2042_v57 = vrot.slane %v1993_v53, 4  ;;  %v2043_v11 = vrot.slane %v1993_v53, 6  ;;  %v2116_v40 = vadd.f32 %v1993_v53, %v4115_v44  ;;  %2321 = vst [vmem:[#allocation1 + $0x20] ss:$4 sm:$0xff] %v2217_v1 }
 0x334   :  { %2322 = vst [vmem:[#allocation1 + $0x21] ss:$4 sm:$0xff] %v2218_v45  ;;  %v4202_v44 = vadd.f32 %v1768_v56, %v4048_v55  ;;  %v1457_v19 = vrot.slane %v4175_v47, 4  ;;  %v2390_v3 = vsel %vm2389_vm4, %v2309_v43, -inf  ;;  %v2397_v7 = vsel %vm2389_vm4, %v2316_v46, -inf  ;;  %v2507_v56 = vld [vmem:[%s4414_s4 + $0x28] sm:$0xff] }
 0x335   :  { %v2117_v22 = vadd.f32 %v2041_v50, %v4127_v34  ;;  %v2118_v13 = vadd.f32 %v2042_v57, %v1839_v48  ;;  %v2119_v0 = vadd.f32 %v2043_v11, %v1840_v29  ;;  %v2172_v37 = vadd.f32 %v3903_v49, %v2116_v40  ;;  %2323 = vst [vmem:[#allocation1 + $0x22] ss:$4 sm:$0xff] %v2219_v27 }
 0x336   :  { %v4211_v29 = vadd.f32 %v1769_v61, %v4057_v30  ;;  %v1771_v60 = vrot.slane %v4129_v5, 2  ;;  %v1772_v55 = vrot.slane %v4129_v5, 4  ;;  %v1773_v14 = vrot.slane %v4129_v5, 6  ;;  %v2506_v30 = vld [vmem:[%s4414_s4 + $0x20] sm:$0xff]  ;;  %2567 = vmatpush.msrb.mxu3 %v2507_v56 }
 0x337   :  { %v2173_v12 = vadd.f32 %v3907_v39, %v2117_v22  ;;  %v2174_v35 = vadd.f32 %v3910_v38, %v2118_v13  ;;  %v2175_v34 = vadd.f32 %v3903_v49, %v2119_v0  ;;  %v2220_v48 = vmax.f32 %v2172_v37, 0.0  ;;  %v4241_v13 = vpop.f32.mrf.mxu1 }
 0x338   :  { %v2320_v1 = vld.sshfl [vmem:[#allocation1] sm:$0xff pattern:$0x73625140]  ;;  %v4217_v43 = vadd.f32 %v1770_v41, %v4061_v36  ;;  %v4227_v15 = vadd.f32 %v4129_v5, %v4068_v54  ;;  %v1774_v62 = vrot.slane %v4189_v33, 2  ;;  %v2391_v36 = vrot.slane %v2390_v3, 4  ;;  %2568 = vmatpush.msrb.mxu3 %v2506_v30  ;;  %v2503_v30 = vld [vmem:[%s4414_s4 + $0x8] sm:$0xff] }
 0x339   :  { %v2221_v45 = vmax.f32 %v2173_v12, 0.0  ;;  %v2222_v27 = vmax.f32 %v2174_v35, 0.0  ;;  %v2223_v63 = vmax.f32 %v2175_v34, 0.0  ;;  %2325 = vst [vmem:[#allocation1] ss:$4 sm:$0xff] %v2220_v48  ;;  %v2398_v46 = vrot.slane %v2397_v7, 4 }
 0x33a   :  { %v1996_v53 = vpop.f32.mrf.mxu2  ;;  %v4232_v61 = vadd.f32 %v1771_v60, %v4078_v17  ;;  %v4235_v41 = vadd.f32 %v1772_v55, %v4082_v24  ;;  %v4238_v54 = vadd.f32 %v1773_v14, %v4086_v2  ;;  %v2404_v22 = vsel %vm2389_vm4, %v2320_v1, -inf }
 0x33b   :  { %v2044_v50 = vrot.slane %v1996_v53, 2  ;;  %v2045_v57 = vrot.slane %v1996_v53, 4  ;;  %v2046_v11 = vrot.slane %v1996_v53, 6  ;;  %v2120_v40 = vadd.f32 %v1996_v53, %v4150_v20  ;;  %2326 = vst [vmem:[#allocation1 + $0x1] ss:$4 sm:$0xff] %v2221_v45 }
 0x33c   :  { %v2324_v5 = vld.sshfl [vmem:[#allocation1 + $0x20] sm:$0xff pattern:$0x73625140]  ;;  %2327 = vst [vmem:[#allocation1 + $0x2] ss:$4 sm:$0xff] %v2222_v27  ;;  %v1775_v24 = vrot.slane %v4189_v33, 4  ;;  %v4251_v12 = vadd.f32 %v4189_v33, %v4094_v31  ;;  %v2392_v35 = vmax.f32 %v2390_v3, %v2391_v36  ;;  %v2399_v55 = vmax.f32 %v2397_v7, %v2398_v46 }
 0x33d   :  { %v2121_v0 = vadd.f32 %v2044_v50, %v4160_v25  ;;  %v2122_v20 = vadd.f32 %v2045_v57, %v4163_v59  ;;  %v2123_v17 = vadd.f32 %v2046_v11, %v4166_v16  ;;  %v2176_v37 = vadd.f32 %v3907_v39, %v2120_v40  ;;  %2329 = vst [vmem:[#allocation1 + $0x20] ss:$4 sm:$0xff] %v2223_v63  ;;  %v2504_v3 = vld [vmem:[%s4414_s4 + $0x10] sm:$0xff] }
 0x33e   :  { %v1776_v2 = vrot.slane %v4189_v33, 6  ;;  %v4257_v16 = vadd.f32 %v1774_v62, %v4099_v51  ;;  %v1777_v60 = vrot.slane %v4241_v13, 2  ;;  %v2405_v14 = vrot.slane %v2404_v22, 4  ;;  %v2505_v33 = vld [vmem:[%s4414_s4 + $0x18] sm:$0xff] }
 0x33f   :  { %v2177_v34 = vadd.f32 %v3910_v38, %v2121_v0  ;;  %v2178_v25 = vadd.f32 %v3903_v49, %v2122_v20  ;;  %v2179_v59 = vadd.f32 %v3907_v39, %v2123_v17  ;;  %v2224_v48 = vmax.f32 %v2176_v37, 0.0  ;;  %2569 = vmatpush.msrb.mxu3 %v2505_v33 }
 0x340   :  { %v1778_v1 = vrot.slane %v4241_v13, 4  ;;  %v2411_v27 = vsel %vm2389_vm4, %v2324_v5, -inf  ;;  %v4269_v51 = vadd.f32 %v1775_v24, %v4103_v58  ;;  %v1779_v7 = vrot.slane %v4241_v13, 6 }
 0x341   :  { %v2225_v45 = vmax.f32 %v2177_v34, 0.0  ;;  %v2226_v31 = vmax.f32 %v2178_v25, 0.0  ;;  %v2227_v63 = vmax.f32 %v2179_v59, 0.0  ;;  %2330 = vst [vmem:[#allocation1 + $0x21] ss:$4 sm:$0xff] %v2224_v48  ;;  %v2393_v62 = vrot.slane %v2392_v35, 2  ;;  %2570 = vmatpush.msrb.mxu3 %v2504_v3  ;;  %v4291_v34 = vpop.f32.mrf.mxu1 }
 0x342   :  { %v1999_v56 = vpop.f32.mrf.mxu2  ;;  %v2400_v58 = vrot.slane %v2399_v55, 2  ;;  %v2406_v11 = vmax.f32 %v2404_v22, %v2405_v14  ;;  %v2412_v40 = vrot.slane %v2411_v27, 4  ;;  %v4285_v24 = vadd.f32 %v1776_v2, %v4119_v42 }
 0x343   :  { %v2047_v53 = vrot.slane %v1999_v56, 2  ;;  %v2048_v36 = vrot.slane %v1999_v56, 4  ;;  %v2049_v46 = vrot.slane %v1999_v56, 6  ;;  %v2124_v50 = vadd.f32 %v1999_v56, %v4196_v28  ;;  %v2328_v57 = vld.sshfl [vmem:[#allocation1] sm:$0xff pattern:$0x73625140]  ;;  %2571 = vmatpush.msrb.mxu3 %v2503_v30 }
 0x344   :  { %2331 = vst [vmem:[#allocation1 + $0x22] ss:$4 sm:$0xff] %v2225_v45  ;;  %v2418_v5 = vsel %vm2389_vm4, %v2328_v57, -inf  ;;  %v2502_v28 = vld [vmem:[%s4414_s4] sm:$0xff]  ;;  %v4289_v22 = vadd.f32 %v4241_v13, %v4124_v9  ;;  %v4297_v42 = vadd.f32 %v1777_v60, %v4138_v32  ;;  %v2401_v2 = vmax.f32 %v2399_v55, %v2400_v58 }
 0x345   :  { %v2125_v0 = vadd.f32 %v2047_v53, %v4202_v44  ;;  %v2126_v20 = vadd.f32 %v2048_v36, %v4211_v29  ;;  %v2127_v17 = vadd.f32 %v2049_v46, %v4217_v43  ;;  %v2180_v37 = vadd.f32 %v3910_v38, %v2124_v50  ;;  %2333 = vst [vmem:[#allocation1] ss:$4 sm:$0xff] %v2226_v31 }
 0x346   :  { %2334 = vst [vmem:[#allocation1 + $0x1] ss:$4 sm:$0xff] %v2227_v63  ;;  %v2394_v44 = vmax.f32 %v2392_v35, %v2393_v62  ;;  %v2419_v29 = vrot.slane %v2418_v5, 4  ;;  %2572 = vmatpush.msrb.mxu3 %v2502_v28  ;;  %v2407_v9 = vrot.slane %v2406_v11, 2  ;;  %v2413_v13 = vmax.f32 %v2411_v27, %v2412_v40 }
 0x347   :  { %v2181_v43 = vadd.f32 %v3903_v49, %v2125_v0  ;;  %v2182_v25 = vadd.f32 %v3907_v39, %v2126_v20  ;;  %v2183_v59 = vadd.f32 %v3910_v38, %v2127_v17  ;;  %v2228_v48 = vmax.f32 %v2180_v37, 0.0 }
 0x348   :  { %v4300_v14 = vadd.f32 %v1778_v1, %v4142_v4  ;;  %v4303_v35 = vadd.f32 %v1779_v7, %v4154_v26  ;;  %v1780_v33 = vrot.slane %v4291_v34, 2  ;;  %v2395_v56 = vrot.slane %v2394_v44, 1 }
 0x349   :  { %v2229_v45 = vmax.f32 %v2181_v43, 0.0  ;;  %v2230_v31 = vmax.f32 %v2182_v25, 0.0  ;;  %2335 = vst [vmem:[#allocation1 + $0x2] ss:$4 sm:$0xff] %v2228_v48  ;;  %v2231_v3 = vmax.f32 %v2183_v59, 0.0  ;;  %v2420_v32 = vmax.f32 %v2418_v5, %v2419_v29 }
 0x34a   :  { %v2002_v63 = vpop.f32.mrf.mxu2  ;;  %v2402_v4 = vrot.slane %v2401_v2, 1  ;;  %v2408_v1 = vmax.f32 %v2406_v11, %v2407_v9  ;;  %v2414_v26 = vrot.slane %v2413_v13, 2  ;;  %v1781_v57 = vrot.slane %v4291_v34, 4 }
 0x34b   :  { %v2050_v60 = vrot.slane %v2002_v63, 2  ;;  %v2051_v30 = vrot.slane %v2002_v63, 4  ;;  %v2052_v55 = vrot.slane %v2002_v63, 6  ;;  %v2128_v27 = vadd.f32 %v2002_v63, %v4227_v15  ;;  %v2332_v62 = vld.sshfl [vmem:[#allocation1 + $0x20] sm:$0xff pattern:$0x73625140] }
 0x34c   :  { %2337 = vst [vmem:[#allocation1 + $0x20] ss:$4 sm:$0xff] %v2229_v45  ;;  %v2425_v7 = vsel %vm2389_vm4, %v2332_v62, -inf  ;;  %v2396_v15 = vmax.f32 %v2394_v44, %v2395_v56  ;;  %v2421_v58 = vrot.slane %v2420_v32, 2  ;;  %v2415_v17 = vmax.f32 %v2413_v13, %v2414_v26 }
 0x34d   :  { %v2129_v53 = vadd.f32 %v2050_v60, %v4232_v61  ;;  %v2130_v36 = vadd.f32 %v2051_v30, %v4235_v41  ;;  %v2131_v46 = vadd.f32 %v2052_v55, %v4238_v54  ;;  %v2184_v50 = vadd.f32 %v3903_v49, %v2128_v27  ;;  %2338 = vst [vmem:[#allocation1 + $0x21] ss:$4 sm:$0xff] %v2230_v31 }
 0x34e   :  { %2339 = vst [vmem:[#allocation1 + $0x22] ss:$4 sm:$0xff] %v2231_v3  ;;  %v2426_v40 = vrot.slane %v2425_v7, 4  ;;  %v2409_v41 = vrot.slane %v2408_v1, 1  ;;  %v2403_v29 = vmax.f32 %v2401_v2, %v2402_v4  ;;  %v2422_v59 = vmax.f32 %v2420_v32, %v2421_v58 }
 0x34f   :  { %v2185_v11 = vadd.f32 %v3907_v39, %v2129_v53  ;;  %v2186_v5 = vadd.f32 %v3910_v38, %v2130_v36  ;;  %v2187_v0 = vadd.f32 %v3903_v49, %v2131_v46  ;;  %v2232_v61 = vmax.f32 %v2184_v50, 0.0 }
 0x350   :  { %v2336_v20 = vld.sshfl [vmem:[#allocation1] sm:$0xff pattern:$0x73625140]  ;;  %v2427_v54 = vmax.f32 %v2425_v7, %v2426_v40  ;;  %v2410_v13 = vmax.f32 %v2408_v1, %v2409_v41  ;;  %v2416_v56 = vrot.slane %v2415_v17, 1  ;;  %v2423_v4 = vrot.slane %v2422_v59, 1 }
 0x351   :  { %v2233_v37 = vmax.f32 %v2185_v11, 0.0  ;;  %v2234_v28 = vmax.f32 %v2186_v5, 0.0  ;;  %v2432_v43 = vsel %vm2389_vm4, %v2336_v20, -inf  ;;  %2341 = vst [vmem:[#allocation1] ss:$4 sm:$0xff] %v2232_v61  ;;  %v2235_v44 = vmax.f32 %v2187_v0, 0.0 }
 0x352   :  { %v2005_v25 = vpop.f32.mrf.mxu2  ;;  %v2428_v48 = vrot.slane %v2427_v54, 2  ;;  %v2433_v9 = vrot.slane %v2432_v43, 4  ;;  %v2424_v0 = vmax.f32 %v2422_v59, %v2423_v4 }
 0x353   :  { %v2053_v45 = vrot.slane %v2005_v25, 2  ;;  %v2054_v31 = vrot.slane %v2005_v25, 4  ;;  %v2055_v3 = vrot.slane %v2005_v25, 6  ;;  %v2132_v63 = vadd.f32 %v2005_v25, %v4251_v12  ;;  %2342 = vst [vmem:[#allocation1 + $0x1] ss:$4 sm:$0xff] %v2233_v37 }
 0x354   :  { %v2429_v60 = vmax.f32 %v2427_v54, %v2428_v48  ;;  %v2434_v30 = vmax.f32 %v2432_v43, %v2433_v9  ;;  %2343 = vst [vmem:[#allocation1 + $0x2] ss:$4 sm:$0xff] %v2234_v28  ;;  %v2535_v12 = vsel %vm2534_vm11, %v2403_v29, %v2396_v15 }
 0x355   :  { %v2133_v2 = vadd.f32 %v2053_v45, %v4257_v16  ;;  %v2134_v55 = vadd.f32 %v2054_v31, %v4269_v51  ;;  %v2135_v27 = vadd.f32 %v2055_v3, %v4285_v24  ;;  %v2188_v32 = vadd.f32 %v3907_v39, %v2132_v63  ;;  %v2340_v62 = vld.sshfl [vmem:[#allocation1 + $0x20] sm:$0xff pattern:$0x73625140] }
 0x356   :  { %v2435_v26 = vrot.slane %v2434_v30, 2  ;;  %v2439_v7 = vsel %vm2389_vm4, %v2340_v62, -inf  ;;  %2345 = vst [vmem:[#allocation1 + $0x20] ss:$4 sm:$0xff] %v2235_v44  ;;  %v2417_v51 = vmax.f32 %v2415_v17, %v2416_v56  ;;  %v2430_v46 = vrot.slane %v2429_v60, 1 }
 0x357   :  { %v2189_v1 = vadd.f32 %v3910_v38, %v2133_v2  ;;  %v2190_v53 = vadd.f32 %v3903_v49, %v2134_v55  ;;  %v2191_v16 = vadd.f32 %v3907_v39, %v2135_v27  ;;  %v2236_v36 = vmax.f32 %v2188_v32, 0.0 }
 0x358   :  { %v2436_v24 = vmax.f32 %v2434_v30, %v2435_v26  ;;  %v2440_v50 = vrot.slane %v2439_v7, 4  ;;  %v2536_v11 = vsel %vm728_vm3, %v2410_v13, %v2535_v12  ;;  %v2431_v17 = vmax.f32 %v2429_v60, %v2430_v46  ;;  %v1735_v13 = vpop.f32.mrf.mxu1 }
 0x359   :  { %v2237_v58 = vmax.f32 %v2189_v1, 0.0  ;;  %v2238_v40 = vmax.f32 %v2190_v53, 0.0  ;;  %2346 = vst [vmem:[#allocation1 + $0x21] ss:$4 sm:$0xff] %v2236_v36  ;;  %v2239_v5 = vmax.f32 %v2191_v16, 0.0  ;;  %v2538_v44 = vsel %vm2537_vm12, %v2417_v51, %v2536_v11  ;;  %v1411_v36 = vpop.f32.mrf.mxu3 }
 0x35a   :  { %v2008_v15 = vpop.f32.mrf.mxu2  ;;  %v2437_v61 = vrot.slane %v2436_v24, 1  ;;  %v2441_v20 = vmax.f32 %v2439_v7, %v2440_v50  ;;  %v1782_v31 = vrot.slane %v4291_v34, 6  ;;  %v2539_v63 = vsel %vm730_vm6, %v2424_v0, %v2538_v44 }
 0x35b   :  { %v2056_v41 = vrot.slane %v2008_v15, 2  ;;  %v2057_v54 = vrot.slane %v2008_v15, 4  ;;  %v2058_v37 = vrot.slane %v2008_v15, 6  ;;  %v2136_v28 = vadd.f32 %v2008_v15, %v4289_v22  ;;  %2347 = vst [vmem:[#allocation1 + $0x22] ss:$4 sm:$0xff] %v2237_v58 }
 0x35c   :  { %v2438_v29 = vmax.f32 %v2436_v24, %v2437_v61  ;;  %v2442_v43 = vrot.slane %v2441_v20, 2  ;;  %v4330_v25 = vld.sshfl [vmem:[#allocation1] sm:$0xff pattern:$0x73625140]  ;;  %v1861_v22 = vadd.f32 %v4291_v34, %v4169_v21  ;;  %v1862_v60 = vadd.f32 %v1780_v33, %v4173_v52 }
 0x35d   :  { %v2137_v48 = vadd.f32 %v2056_v41, %v4297_v42  ;;  %v2138_v9 = vadd.f32 %v2057_v54, %v4300_v14  ;;  %v2139_v59 = vadd.f32 %v2058_v37, %v4303_v35  ;;  %v2192_v45 = vadd.f32 %v3910_v38, %v2136_v28  ;;  %2349 = vst [vmem:[#allocation1] ss:$4 sm:$0xff] %v2238_v40 }
 0x35e   :  { %v2443_v3 = vmax.f32 %v2441_v20, %v2442_v43  ;;  %2350 = vst [vmem:[#allocation1 + $0x1] ss:$4 sm:$0xff] %v2239_v5  ;;  %v1863_v21 = vadd.f32 %v1781_v57, %v4183_v10  ;;  %v2541_v2 = vsel %vm2540_vm13, %v2431_v17, %v2539_v63  ;;  %v1864_v62 = vadd.f32 %v1782_v31, %v4187_v18 }
 0x35f   :  { %v2193_v56 = vadd.f32 %v3903_v49, %v2137_v48  ;;  %v2194_v42 = vadd.f32 %v3907_v39, %v2138_v9  ;;  %v2195_v14 = vadd.f32 %v3910_v38, %v2139_v59  ;;  %v2240_v35 = vmax.f32 %v2192_v45, 0.0 }
 0x360   :  { %v2444_v30 = vrot.slane %v2443_v3, 1  ;;  %v2542_v32 = vsel %vm732_vm8, %v2438_v29, %v2541_v2  ;;  %v1458_v57 = vrot.slane %v4175_v47, 6  ;;  %v1538_v1 = vadd.f32 %v4175_v47, %v3800_v23  ;;  %v1738_v43 = vpop.f32.mrf.mxu1 }
 0x361   :  { %v2241_v55 = vmax.f32 %v2193_v56, 0.0  ;;  %v2242_v27 = vmax.f32 %v2194_v42, 0.0  ;;  %2351 = vst [vmem:[#allocation1 + $0x2] ss:$4 sm:$0xff] %v2240_v35  ;;  %v2243_v4 = vmax.f32 %v2195_v14, 0.0  ;;  %v4603_v53 = vrot.slane %v3800_v23, 2 }
 0x362   :  { %v2445_v26 = vmax.f32 %v2443_v3, %v2444_v30  ;;  %v2011_v7 = vpop.f32.mrf.mxu2  ;;  %v2348_v52 = vld.sshfl [vmem:[#allocation1 + $0x20] sm:$0xff pattern:$0x73625140]  ;;  %v4604_v58 = vrot.slane %v3800_v23, 4  ;;  %v1783_v11 = vrot.slane %v1735_v13, 2  ;;  %v1784_v5 = vrot.slane %v1735_v13, 4 }
 0x363   :  { %v2059_v33 = vrot.slane %v2011_v7, 2  ;;  %v2060_v12 = vrot.slane %v2011_v7, 4  ;;  %v2061_v34 = vrot.slane %v2011_v7, 6  ;;  %v2140_v10 = vadd.f32 %v2011_v7, %v1861_v22  ;;  %2353 = vst [vmem:[#allocation1 + $0x20] ss:$4 sm:$0xff] %v2241_v55 }
 0x364   :  { %v1539_v18 = vadd.f32 %v1456_v6, %v4603_v53  ;;  %v2544_v16 = vsel %vm2543_vm14, %v2445_v26, %v2542_v32  ;;  %2354 = vst [vmem:[#allocation1 + $0x21] ss:$4 sm:$0xff] %v2242_v27  ;;  %v1540_v40 = vadd.f32 %v1457_v19, %v4604_v58  ;;  %v1785_v15 = vrot.slane %v1735_v13, 6 }
 0x365   :  { %2737 = vmatmul.msk.f32.vlgmr.msrb.gmra.mxu3 %vm2552_vm15, %v2544_v16  ;;  %v2141_v51 = vadd.f32 %v2059_v33, %v1862_v60  ;;  %v2142_v46 = vadd.f32 %v2060_v12, %v1863_v21  ;;  %v2143_v24 = vadd.f32 %v2061_v34, %v1864_v62  ;;  %v2196_v50 = vadd.f32 %v3903_v49, %v2140_v10 }
 0x366   :  { %2355 = vst [vmem:[#allocation1 + $0x22] ss:$4 sm:$0xff] %v2243_v4  ;;  %v4605_v41 = vrot.slane %v3800_v23, 6  ;;  %v1459_v37 = vrot.slane %v1411_v36, 2  ;;  %v1460_v28 = vrot.slane %v1411_v36, 4  ;;  %v1461_v17 = vrot.slane %v1411_v36, 6 }
 0x367   :  { %v2197_v6 = vadd.f32 %v3907_v39, %v2141_v51  ;;  %v2198_v0 = vadd.f32 %v3910_v38, %v2142_v46  ;;  %v2199_v61 = vadd.f32 %v3903_v49, %v2143_v24  ;;  %v2244_v20 = vmax.f32 %v2196_v50, 0.0 }
 0x368   :  { %v1541_v54 = vadd.f32 %v1458_v57, %v4605_v41  ;;  %v2352_v29 = vld.sshfl [vmem:[#allocation1] sm:$0xff pattern:$0x73625140]  ;;  %v1865_v47 = vadd.f32 %v1735_v13, %v1538_v1  ;;  %v1542_v19 = vadd.f32 %v1411_v36, %v3812_v8  ;;  %v1866_v9 = vadd.f32 %v1783_v11, %v1539_v18 }
 0x369   :  { %v2245_v44 = vmax.f32 %v2197_v6, 0.0  ;;  %v2246_v48 = vmax.f32 %v2198_v0, 0.0  ;;  %2357 = vst [vmem:[#allocation1] ss:$4 sm:$0xff] %v2244_v20  ;;  %v1867_v59 = vadd.f32 %v1784_v5, %v1540_v40  ;;  %v2247_v31 = vmax.f32 %v2199_v61, 0.0 }
 0x36a   :  { %v1868_v45 = vadd.f32 %v1785_v15, %v1541_v54  ;;  %v2014_v49 = vpop.f32.mrf.mxu2  ;;  %v4606_v56 = vrot.slane %v3812_v8, 2  ;;  %v1786_v13 = vrot.slane %v1738_v43, 2  ;;  %v1787_v14 = vrot.slane %v1738_v43, 4 }
 0x36b   :  { %v2062_v22 = vrot.slane %v2014_v49, 2  ;;  %v2063_v3 = vrot.slane %v2014_v49, 4  ;;  %v2064_v23 = vrot.slane %v2014_v49, 6  ;;  %v2144_v63 = vadd.f32 %v2014_v49, %v1865_v47  ;;  %2358 = vst [vmem:[#allocation1 + $0x1] ss:$4 sm:$0xff] %v2245_v44 }
 0x36c   :  { %v1543_v42 = vadd.f32 %v1459_v37, %v4606_v56  ;;  %2359 = vst [vmem:[#allocation1 + $0x2] ss:$4 sm:$0xff] %v2246_v48  ;;  %v2453_v35 = vsel %vm2389_vm4, %v2348_v52, -inf  ;;  %v4607_v27 = vrot.slane %v3812_v8, 4  ;;  %v1788_v62 = vrot.slane %v1738_v43, 6 }
 0x36d   :  { %v2145_v60 = vadd.f32 %v2062_v22, %v1866_v9  ;;  %v2146_v21 = vadd.f32 %v2063_v3, %v1867_v59  ;;  %v2147_v30 = vadd.f32 %v2064_v23, %v1868_v45  ;;  %v2200_v2 = vadd.f32 %v3907_v39, %v2144_v63  ;;  %v2356_v55 = vld.sshfl [vmem:[#allocation1 + $0x20] sm:$0xff pattern:$0x73625140] }
 0x36e   :  { %v1544_v32 = vadd.f32 %v1460_v28, %v4607_v27  ;;  %2361 = vst [vmem:[#allocation1 + $0x20] ss:$4 sm:$0xff] %v2247_v31  ;;  %v2446_v4 = vsel %vm2389_vm4, %v4330_v25, -inf  ;;  %v2460_v26 = vsel %vm2389_vm4, %v2352_v29, -inf  ;;  %v2760_v52 = vld [vmem:[%s4413_s3] ss:$0 sm:$0xff]  ;;  %v1869_v1 = vadd.f32 %v1738_v43, %v1542_v19 }
 0x36f   :  { %v2201_v7 = vadd.f32 %v3910_v38, %v2145_v60  ;;  %v2202_v33 = vadd.f32 %v2760_v52, %v2146_v21  ;;  %v2203_v12 = vadd.f32 %v3907_v39, %v2147_v30  ;;  %v2248_v34 = vmax.f32 %v2200_v2, 0.0 }
 0x370   :  { %v4608_v10 = vrot.slane %v3812_v8, 6  ;;  %v1870_v53 = vadd.f32 %v1786_v13, %v1543_v42  ;;  %v2454_v18 = vrot.slane %v2453_v35, 4  ;;  %v1871_v16 = vadd.f32 %v1787_v14, %v1544_v32 }
 0x371   :  { %v2249_v25 = vmax.f32 %v2201_v7, 0.0  ;;  %v2250_v36 = vmax.f32 %v2202_v33, 0.0  ;;  %2362 = vst [vmem:[#allocation1 + $0x21] ss:$4 sm:$0xff] %v2248_v34  ;;  %v2467_v51 = vsel %vm2389_vm4, %v2356_v55, -inf  ;;  %v2251_v24 = vmax.f32 %v2203_v12, 0.0 }
 0x372   :  { %v1545_v57 = vadd.f32 %v1461_v17, %v4608_v10  ;;  %v2017_v50 = vpop.f32.mrf.mxu2  ;;  %v2447_v58 = vrot.slane %v2446_v4, 4  ;;  %v2461_v40 = vrot.slane %v2460_v26, 4  ;;  %v2455_v0 = vmax.f32 %v2453_v35, %v2454_v18 }
 0x373   :  { %v2065_v11 = vrot.slane %v2017_v50, 2  ;;  %v2066_v5 = vrot.slane %v2017_v50, 4  ;;  %v2067_v15 = vrot.slane %v2017_v50, 6  ;;  %v2148_v6 = vadd.f32 %v2017_v50, %v1869_v1  ;;  %v2360_v8 = vld.sshfl [vmem:[#allocation1] sm:$0xff pattern:$0x73625140] }
 0x374   :  { %v1872_v46 = vadd.f32 %v1788_v62, %v1545_v57  ;;  %2363 = vst [vmem:[#allocation1 + $0x22] ss:$4 sm:$0xff] %v2249_v25  ;;  %v2468_v61 = vrot.slane %v2467_v51, 4  ;;  %v2474_v20 = vsel %vm2389_vm4, %v2360_v8, -inf  ;;  %v2448_v17 = vmax.f32 %v2446_v4, %v2447_v58 }
 0x375   :  { %v2149_v41 = vadd.f32 %v2065_v11, %v1870_v53  ;;  %v2150_v54 = vadd.f32 %v2066_v5, %v1871_v16  ;;  %v2204_v28 = vadd.f32 %v3910_v38, %v2148_v6  ;;  %2365 = vst [vmem:[#allocation1] ss:$4 sm:$0xff] %v2250_v36  ;;  %v2462_v29 = vmax.f32 %v2460_v26, %v2461_v40 }
 0x376   :  { %v2151_v37 = vadd.f32 %v2067_v15, %v1872_v46  ;;  %2366 = vst [vmem:[#allocation1 + $0x1] ss:$4 sm:$0xff] %v2251_v24  ;;  %v2475_v47 = vrot.slane %v2474_v20, 4  ;;  %v2456_v45 = vrot.slane %v2455_v0, 2  ;;  %v2469_v31 = vmax.f32 %v2467_v51, %v2468_v61 }
 0x377   :  { %v2205_v19 = vadd.f32 %v2760_v52, %v2149_v41  ;;  %v2206_v43 = vadd.f32 %v3907_v39, %v2150_v54  ;;  %v2252_v48 = vmax.f32 %v2204_v28, 0.0  ;;  %v2463_v22 = vrot.slane %v2462_v29, 2  ;;  %v2759_v28 = vld [vmem:[%s4415_s5] ss:$0 sm:$0xff] }
 0x378   :  { %v2207_v44 = vadd.f32 %v3910_v38, %v2151_v37  ;;  %v2476_v3 = vmax.f32 %v2474_v20, %v2475_v47  ;;  %v2449_v63 = vrot.slane %v2448_v17, 2  ;;  %v2457_v42 = vmax.f32 %v2455_v0, %v2456_v45 }
 0x379   :  { %v2253_v9 = vmax.f32 %v2205_v19, 0.0  ;;  %v2254_v59 = vmax.f32 %v2206_v43, 0.0  ;;  %2367 = vst [vmem:[#allocation1 + $0x2] ss:$4 sm:$0xff] %v2252_v48  ;;  %v2470_v13 = vrot.slane %v2469_v31, 2  ;;  %v2464_v38 = vmax.f32 %v2462_v29, %v2463_v22 }
 0x37a   :  { %v2255_v49 = vmax.f32 %v2207_v44, 0.0  ;;  %v2477_v14 = vrot.slane %v2476_v3, 2  ;;  %v2450_v35 = vmax.f32 %v2448_v17, %v2449_v63  ;;  %v2458_v30 = vrot.slane %v2457_v42, 1 }
 0x37b   :  { %v2364_v23 = vld.sshfl [vmem:[#allocation1 + $0x20] sm:$0xff pattern:$0x73625140]  ;;  %v2471_v2 = vmax.f32 %v2469_v31, %v2470_v13  ;;  %v2465_v32 = vrot.slane %v2464_v38, 1 }
 0x37c   :  { %2369 = vst [vmem:[#allocation1 + $0x20] ss:$4 sm:$0xff] %v2253_v9  ;;  %v2481_v56 = vsel %vm2389_vm4, %v2364_v23, -inf  ;;  %v2478_v62 = vmax.f32 %v2476_v3, %v2477_v14  ;;  %v2451_v26 = vrot.slane %v2450_v35, 1  ;;  %v2459_v12 = vmax.f32 %v2457_v42, %v2458_v30 }
 0x37d   :  { %2370 = vst [vmem:[#allocation1 + $0x21] ss:$4 sm:$0xff] %v2254_v59  ;;  %v2482_v39 = vrot.slane %v2481_v56, 4  ;;  %v2472_v34 = vrot.slane %v2471_v2, 1  ;;  %v2466_v10 = vmax.f32 %v2464_v38, %v2465_v32 }
 0x37e   :  { %2371 = vst [vmem:[#allocation1 + $0x22] ss:$4 sm:$0xff] %v2255_v49  ;;  %v2479_v57 = vrot.slane %v2478_v62, 1  ;;  %v2452_v18 = vmax.f32 %v2450_v35, %v2451_v26 }
 0x37f   :  { %v2483_v60 = vmax.f32 %v2481_v56, %v2482_v39  ;;  %v2473_v51 = vmax.f32 %v2471_v2, %v2472_v34 }
 0x380   :  { %v2368_v21 = vld.sshfl [vmem:[#allocation1] sm:$0xff pattern:$0x73625140]  ;;  %v2545_v24 = vsel %vm2534_vm11, %v2459_v12, %v2452_v18  ;;  %v2480_v50 = vmax.f32 %v2478_v62, %v2479_v57 }
 0x381   :  { %v2484_v55 = vrot.slane %v2483_v60, 2  ;;  %v2488_v27 = vsel %vm2389_vm4, %v2368_v21, -inf  ;;  %v2546_v40 = vsel %vm728_vm3, %v2466_v10, %v2545_v24 }
 0x382   :  { %v2489_v4 = vrot.slane %v2488_v27, 4  ;;  %v2547_v8 = vsel %vm2537_vm12, %v2473_v51, %v2546_v40 }
 0x383   :  { %v2485_v7 = vmax.f32 %v2483_v60, %v2484_v55  ;;  %v2548_v0 = vsel %vm730_vm6, %v2480_v50, %v2547_v8 }
 0x384   :  { %v2490_v52 = vmax.f32 %v2488_v27, %v2489_v4 }
 0x385   :  { %v2372_v33 = vld.sshfl [vmem:[#allocation1 + $0x20] sm:$0xff pattern:$0x73625140]  ;;  %v2486_v16 = vrot.slane %v2485_v7, 1 }
 0x386   :  { %v2491_v1 = vrot.slane %v2490_v52, 2  ;;  %v2495_v53 = vsel %vm2389_vm4, %v2372_v33, -inf }
 0x387   :  { %v2496_v25 = vrot.slane %v2495_v53, 4  ;;  %v2487_v11 = vmax.f32 %v2485_v7, %v2486_v16 }
 0x388   :  { %v2492_v36 = vmax.f32 %v2490_v52, %v2491_v1 }
 0x389   :  { %v2497_v46 = vmax.f32 %v2495_v53, %v2496_v25  ;;  %v2549_v20 = vsel %vm2540_vm13, %v2487_v11, %v2548_v0 }
 0x38a   :  { %v2493_v58 = vrot.slane %v2492_v36, 1 }
 0x38b   :  { %v2498_v5 = vrot.slane %v2497_v46, 2 }
 0x38c   :  { %v2494_v15 = vmax.f32 %v2492_v36, %v2493_v58 }
 0x38d   :  { %v2499_v6 = vmax.f32 %v2497_v46, %v2498_v5 }
 0x38e   :  { %v2550_v41 = vsel %vm732_vm8, %v2494_v15, %v2549_v20 }
 0x38f   :  { %v2500_v61 = vrot.slane %v2499_v6, 1 }
 0x391   :  { %v2501_v54 = vmax.f32 %v2499_v6, %v2500_v61 }
 0x393   :  { %v2551_v37 = vsel %vm2543_vm14, %v2501_v54, %v2550_v41 }
 0x394   :  { %2738 = vmatmul.msk.f32.gmra.mxu3 %vm2552_vm15, %v2551_v37 }
 0x3e8   :  { %v2574_v17 = vpop.f32.mrf.mxu3 }
 0x3e9   :  { %v2575_v29 = vadd.f32 %v2759_v28, %v2574_v17 }
 0x3eb   :  { %2581 = vst.msk [vmem:[#allocation2] sm:$0xff] %vm2580_vm0, %v2575_v29 }
 0x417   :  { %v2577_v47 = vpop.f32.mrf.mxu3 }
 0x418   :  { %v2578_v19 = vadd.f32 %v2759_v28, %v2577_v47 }
 0x41a   :  { %2582 = vst.msk [vmem:[#allocation2 + $0x8] sm:$0xff] %vm2580_vm0, %v2578_v19 }
 0x41b   :  { %2595 = dma.vmem_to_hbm [thread:$0]  %s2588_s29, 256, %s2590_s8, [#allocation3], %s2789_s9, %s2789_s9, %s2790_s1  }
 0x41c   :  { %2785 = dma.done.wait [#allocation3], 256  }
 0x41d   :  { %2786 = vsyncadd [#allocation3], 4294967040 }
 0x41e   :  { %2600 = vsyncpa [#allocation3], 1 }

</bundles_post_ra>
